<compile_context>
chip_gen: v7x
topology: tpu7x:2x2x1
jax: 0.10.0
libtpu: 0.0.40
codegen_flags: <defaults>
</compile_context>

<pallas_src>
import functools

import numpy as np
import jax
import jax.numpy as jnp
from jax.experimental import pallas as pl
from jax.experimental.pallas import tpu as pltpu

NGF = 8
BN_EPS = 1e-5


# --------------------------------------------------------------------------
# Host-side helpers (plain numpy, run once at init / trace time).
# --------------------------------------------------------------------------
def _bn_fold(c):
    """PyTorch-default inference-mode BatchNorm2d -> per-channel scale/shift."""
    gamma = np.ones((c,), np.float32)
    beta = np.zeros((c,), np.float32)
    mean = np.zeros((c,), np.float32)
    var = np.ones((c,), np.float32)
    scale = gamma / np.sqrt(var + BN_EPS)
    shift = beta - mean * scale
    return scale, shift


def _band_from_taps(taps, w_in, w_out, stride, col_offset):
    """Fold the width dimension of im2col into a dense 'banded' weight matrix.

    taps: (KW, Cin, Cout) weights for one kernel row.  Returns M of shape
    (w_in*Cin, w_out*Cout) with (A @ M)[., j*Cout+co] = sum_{b,ci}
    A[., v*Cin+ci] * taps[b,ci,co], v = stride*j + b - col_offset
    (out-of-range v -> zero, i.e. zero padding along the width).
    """
    kw, cin, cout = taps.shape
    m = np.zeros((w_in * cin, w_out * cout), np.float32)
    for j in range(w_out):
        for b in range(kw):
            v = stride * j + b - col_offset
            if 0 <= v < w_in:
                m[v * cin:(v + 1) * cin, j * cout:(j + 1) * cout] = taps[b]
    return m


def _reflect_index(p, size, pad):
    """ReflectionPad index map: padded index p -> source index in [0, size)."""
    q = p - pad
    if q < 0:
        q = -q
    elif q > size - 1:
        q = 2 * (size - 1) - q
    return q


def _padded_rows(h):
    # reflection-padded row count (h+6), rounded up to a multiple of 8 so the
    # in-kernel 2D<->3D reshapes stay sublane-tile aligned.
    return ((h + 6 + 7) // 8) * 8


# --------------------------------------------------------------------------
# Fused Pallas kernel: the whole forward for `bt` batch-stacked images.
# Activations are (rows = bt * H-like, lanes = W*C flattened) 2D slabs.
# --------------------------------------------------------------------------
def _fused_generator_kernel(x_ref, m1_ref, m2_ref, wue_ref, wuo_ref,
                            rse_ref, rso_ref, g_ref,
                            b1_ref, b2_ref, bu_ref, bf_ref,
                            o_ref, *, bt, h, w):
    f32, bf16 = jnp.float32, jnp.bfloat16
    ho, wo = h // 2, w // 2
    n1 = w * NGF            # block1 output lanes (128 @ w=16)
    n2 = wo * 2 * NGF       # block2 output lanes (128 @ w=16)
    nu = 2 * wo * NGF       # upsample phase-pair lanes (128 @ w=16)
    hp = _padded_rows(h)    # 24 @ h=16

    # ---- block1: ReflectionPad(3)+Conv(3,ngf,7)+BN+ReLU --------------------
    # x_ref holds the wrapper-built merged-7-tap LHS (rows permuted to
    # [even conv rows..., odd conv rows...] per image); one K=7*(w+6)*3 dot.
    o1 = jnp.dot(x_ref[...], m1_ref[...], preferred_element_type=f32)
    o1 = jnp.maximum(o1 + b1_ref[...], 0.0)          # (bt*h, n1) f32
    o1 = o1.reshape(bt, h, n1)
    ev = o1[:, :ho, :]                                # conv rows 2i
    od = o1[:, ho:, :]                                # conv rows 2i+1

    # ---- block2: Conv(ngf,2ngf,3,s=2,p=1)+BN+ReLU ---------------------------
    # stride-2 row gather = aligned slices of o1; one merged 3-tap dot.
    od_m1 = jnp.concatenate(                          # conv rows 2i-1 (zero pad)
        [jnp.zeros((bt, 1, n1), f32), od[:, :ho - 1, :]], axis=1)
    lhs2 = jnp.concatenate([od_m1.reshape(bt * ho, n1),
                            ev.reshape(bt * ho, n1),
                            od.reshape(bt * ho, n1)], axis=-1).astype(bf16)
    o2 = jnp.dot(lhs2, m2_ref[...], preferred_element_type=f32)
    o2 = jnp.maximum(o2 + b2_ref[...], 0.0)           # (bt*ho, n2) f32

    # ---- upsampl_inf2: ConvTranspose(2ngf,ngf,3,s=2,p=1,op=1)+BN+ReLU -------
    # 4-phase sub-pixel decomposition, phases kept column-separated:
    #   e_up rows = output rows 2m   -> [p00 | p01]
    #   o_up rows = output rows 2m+1 -> [p10 | p11]  (needs in[m] and in[m+1])
    o2_3 = o2.reshape(bt, ho, n2)
    o2s = jnp.concatenate(                             # in[m+1] (zero last row)
        [o2_3[:, 1:, :], jnp.zeros((bt, 1, n2), f32)], axis=1
    ).reshape(bt * ho, n2)
    e_up = jnp.maximum(
        jnp.dot(o2.astype(bf16), wue_ref[...], preferred_element_type=f32)
        + bu_ref[...], 0.0).astype(bf16)               # (bt*ho, nu)
    lhs_o = jnp.concatenate([o2, o2s], axis=-1).astype(bf16)
    o_up = jnp.maximum(
        jnp.dot(lhs_o, wuo_ref[...], preferred_element_type=f32)
        + bu_ref[...], 0.0).astype(bf16)               # (bt*ho, nu)

    # ---- blockf_inf: ReflectionPad(3)+Conv(ngf,3,7)+bias --------------------
    # Row interleave + reflect pad via two 0/1 selection dots; column
    # de-interleave + reflect pad already folded into g host-side.
    ypc = (jnp.dot(rse_ref[...], e_up, preferred_element_type=f32)
           + jnp.dot(rso_ref[...], o_up, preferred_element_type=f32))
    ypc = ypc.reshape(bt, hp, nu)                      # padded rows, per image
    lhsf = jnp.concatenate(
        [ypc[:, a:a + h, :].reshape(bt * h, nu) for a in range(7)],
        axis=-1).astype(bf16)                          # (bt*h, 7*nu)
    outf = jnp.dot(lhsf, g_ref[...], preferred_element_type=f32) + bf_ref[...]
    o_ref[...] = outf.astype(o_ref.dtype)              # lane-dense (bt*h, 128)


# --------------------------------------------------------------------------
# Parameter preparation (weights, BN folds, banded layouts) -- done once.
# --------------------------------------------------------------------------
def init_params(key, h=16, w=16):
    ho, wo = h // 2, w // 2
    k1, k2, k3, k4, k5 = jax.random.split(key, 5)

    w1 = np.asarray(0.1 * jax.random.normal(k1, (NGF, 3, 7, 7), jnp.float32))
    w2 = np.asarray(0.1 * jax.random.normal(k2, (2 * NGF, NGF, 3, 3), jnp.float32))
    wt = np.asarray(0.1 * jax.random.normal(k3, (2 * NGF, NGF, 3, 3), jnp.float32))
    wf = np.asarray(0.1 * jax.random.normal(k4, (3, NGF, 7, 7), jnp.float32))
    bfin = np.asarray(0.1 * jax.random.normal(k5, (3,), jnp.float32))

    p = {}

    # block1: Conv2d(3, ngf, 7, bias=False) + BN folded; 7 taps merged along K.
    s1, t1 = _bn_fold(NGF)
    w1s = w1 * s1[:, None, None, None]
    p['m1'] = jnp.asarray(np.concatenate([
        _band_from_taps(np.transpose(w1s[:, :, a, :], (2, 1, 0)),
                        w + 6, w, 1, 0) for a in range(7)], axis=0),
        jnp.bfloat16)                                   # (7*(w+6)*3, w*ngf)
    p['b1'] = jnp.asarray(np.tile(t1, w)[None, :], jnp.float32)

    # block2: Conv2d(ngf, 2ngf, 3, s=2, p=1, bias=False) + BN; 3 taps merged.
    s2, t2 = _bn_fold(2 * NGF)
    w2s = w2 * s2[:, None, None, None]
    p['m2'] = jnp.asarray(np.concatenate([
        _band_from_taps(np.transpose(w2s[:, :, a, :], (2, 1, 0)),
                        w, wo, 2, 1) for a in range(3)], axis=0),
        jnp.bfloat16)                                   # (3*w*ngf, wo*2ngf)
    p['b2'] = jnp.asarray(np.tile(t2, wo)[None, :], jnp.float32)

    # upsampl_inf2: ConvTranspose2d(2ngf, ngf, 3, s=2, p=1, op=1) + BN.
    # Phases: out[2m,2n]=in[m,n]W[1,1]; out[2m,2n+1]=in[m,n]W[1,2]+in[m,n+1]W[1,0]
    #         out[2m+1,2n]=in[m,n]W[2,1]+in[m+1,n]W[0,1]
    #         out[2m+1,2n+1]=in[m,n]W[2,2]+in[m,n+1]W[2,0]+in[m+1,n]W[0,2]+in[m+1,n+1]W[0,0]
    su, tu = _bn_fold(NGF)
    wts = wt * su[None, :, None, None]                  # (cin=2ngf, cout=ngf, 3, 3)

    def _band_u(taps):
        return _band_from_taps(np.stack(taps), wo, wo, 1, 0)

    m00 = _band_u([wts[:, :, 1, 1]])
    m01 = _band_u([wts[:, :, 1, 2], wts[:, :, 1, 0]])
    m10a, m10b = _band_u([wts[:, :, 2, 1]]), _band_u([wts[:, :, 0, 1]])
    m11a = _band_u([wts[:, :, 2, 2], wts[:, :, 2, 0]])
    m11b = _band_u([wts[:, :, 0, 2], wts[:, :, 0, 0]])
    p['wue'] = jnp.asarray(np.concatenate([m00, m01], axis=1), jnp.bfloat16)
    p['wuo'] = jnp.asarray(np.concatenate(
        [np.concatenate([m10a, m11a], axis=1),
         np.concatenate([m10b, m11b], axis=1)], axis=0), jnp.bfloat16)
    p['bu'] = jnp.asarray(np.tile(tu, 2 * wo)[None, :], jnp.float32)

    # blockf_inf: Conv2d(ngf, 3, 7) with bias.  Fold the column phase
    # de-interleave + ReflectionPad(3) (CS) into the 7-tap banded weights; pad
    # output lanes to a multiple of 128 for lane-dense stores.
    cs = np.zeros((2, wo * NGF, (w + 6) * NGF), np.float32)
    for u in range(w + 6):
        q = _reflect_index(u, w, 3)
        for co in range(NGF):
            cs[q % 2, (q // 2) * NGF + co, u * NGF + co] = 1.0
    csv = np.concatenate([cs[0], cs[1]], axis=0)        # (2*wo*ngf, (w+6)*ngf)
    kf = 2 * wo * NGF
    nf_pad = max(128, -(-(w * 3) // 128) * 128)
    g = np.zeros((7 * kf, nf_pad), np.float32)
    for a in range(7):
        mf_a = _band_from_taps(np.transpose(wf[:, :, a, :], (2, 1, 0)),
                               w + 6, w, 1, 0)          # ((w+6)*ngf, w*3)
        g[a * kf:(a + 1) * kf, :w * 3] = csv @ mf_a
    p['g'] = jnp.asarray(g, jnp.bfloat16)
    bfv = np.zeros((nf_pad,), np.float32)
    bfv[:w * 3] = np.tile(bfin, w)
    p['bf'] = jnp.asarray(bfv[None, :], jnp.float32)
    return p


# --------------------------------------------------------------------------
# Forward pass (matches GeneratorResnet.forward): one fused pallas_call.
# --------------------------------------------------------------------------
def generator_resnet_forward(x_nchw, p, b_tile=4):
    n, c, h, w = x_nchw.shape
    assert c == 3 and h % 2 == 0 and w % 2 == 0
    assert n % b_tile == 0, "batch must be divisible by b_tile"
    ho = h // 2
    hp = _padded_rows(h)
    nf_pad = p['g'].shape[1]

    # XLA-side layout plumbing on the raw network input only:
    # NCHW -> NHWC, ReflectionPad2d(3), flatten (W, C) into lanes, build the
    # merged-7-tap block1 LHS (row im2col) in bf16.  Per-image LHS rows are
    # permuted to [0,2,...,h-2, 1,3,...,h-1] so block1's output exposes the
    # even/odd rows needed by the stride-2 conv as aligned slices.
    x = jnp.transpose(x_nchw, (0, 2, 3, 1)).astype(jnp.float32)
    xp = jnp.pad(x, ((0, 0), (3, 3), (3, 3), (0, 0)), mode='reflect')
    xr = xp.reshape(n, h + 6, (w + 6) * 3)
    row_order = np.concatenate([np.arange(0, h, 2), np.arange(1, h, 2)])
    tap_rows = row_order[:, None] + np.arange(7)[None, :]        # (h, 7)
    lhs1 = xr[:, tap_rows, :].reshape(n * h, 7 * (w + 6) * 3)
    lhs1 = lhs1.astype(jnp.bfloat16)

    # 0/1 row interleave + ReflectionPad(3) selection for blockf (block-diag
    # over the b_tile images of a grid step, bf16, built once at trace time).
    rse_np = np.zeros((b_tile * hp, b_tile * ho), np.float32)
    rso_np = np.zeros((b_tile * hp, b_tile * ho), np.float32)
    for b in range(b_tile):
        for r in range(h + 6):
            q = _reflect_index(r, h, 3)
            tgt = rse_np if q % 2 == 0 else rso_np
            tgt[b * hp + r, b * ho + q // 2] = 1.0
    rse = jnp.asarray(rse_np, jnp.bfloat16)
    rso = jnp.asarray(rso_np, jnp.bfloat16)

    kernel = functools.partial(_fused_generator_kernel, bt=b_tile, h=h, w=w)

    def const_spec(arr):
        nd = arr.ndim
        return pl.BlockSpec(arr.shape, lambda i, _nd=nd: (0,) * _nd)

    out_flat = pl.pallas_call(
        kernel,
        out_shape=jax.ShapeDtypeStruct((n * h, nf_pad), jnp.float32),
        grid_spec=pltpu.PrefetchScalarGridSpec(
            num_scalar_prefetch=0,
            grid=(n // b_tile,),
            in_specs=[
                pl.BlockSpec((b_tile * h, 7 * (w + 6) * 3), lambda i: (i, 0)),
                const_spec(p['m1']), const_spec(p['m2']),
                const_spec(p['wue']), const_spec(p['wuo']),
                const_spec(rse), const_spec(rso), const_spec(p['g']),
                const_spec(p['b1']), const_spec(p['b2']),
                const_spec(p['bu']), const_spec(p['bf']),
            ],
            out_specs=pl.BlockSpec((b_tile * h, nf_pad), lambda i: (i, 0)),
        ),
        compiler_params=pltpu.CompilerParams(
            dimension_semantics=("parallel",)),
    )(lhs1, p['m1'], p['m2'], p['wue'], p['wuo'], rse, rso, p['g'],
      p['b1'], p['b2'], p['bu'], p['bf'])

    out = out_flat[:, :w * 3].reshape(n, h, w, 3)
    return jnp.transpose(out, (0, 3, 1, 2))              # back to NCHW


if __name__ == "__main__":
    key = jax.random.PRNGKey(0)
    kx, kp = jax.random.split(key)
    batch, h, w = 16, 16, 16                 # b_tile=8 -> grid=(2,), M up to 128
    x = jax.random.normal(kx, (batch, 3, h, w), jnp.float32)  # NCHW input
    params = init_params(kp, h=h, w=w)

    fwd = jax.jit(functools.partial(generator_resnet_forward, b_tile=8))
    out = jax.block_until_ready(fwd(x, params))

    assert out.shape == (batch, 3, h, w), out.shape
    assert bool(jnp.all(jnp.isfinite(out)))
    print("KERNEL_OK")
</pallas_src>

<mosaic_0001>
module attributes {stable_mosaic.version = 11 : i64} {
  func.func @_fused_generator_kernel(%arg0: i32, %arg1: memref<128x462xbf16, #tpu.memory_space<vmem>>, %arg2: memref<462x128xbf16, #tpu.memory_space<vmem>>, %arg3: memref<384x128xbf16, #tpu.memory_space<vmem>>, %arg4: memref<128x128xbf16, #tpu.memory_space<vmem>>, %arg5: memref<256x128xbf16, #tpu.memory_space<vmem>>, %arg6: memref<192x64xbf16, #tpu.memory_space<vmem>>, %arg7: memref<192x64xbf16, #tpu.memory_space<vmem>>, %arg8: memref<896x128xbf16, #tpu.memory_space<vmem>>, %arg9: memref<1x128xf32, #tpu.memory_space<vmem>>, %arg10: memref<1x128xf32, #tpu.memory_space<vmem>>, %arg11: memref<1x128xf32, #tpu.memory_space<vmem>>, %arg12: memref<1x128xf32, #tpu.memory_space<vmem>>, %arg13: memref<128x128xf32, #tpu.memory_space<vmem>>) attributes {dimension_semantics = [#tpu.dimension_semantics<parallel>], iteration_bounds = array<i64: 2>, scalar_prefetch = 0 : i64, scratch_operands = 0 : i64, tpu.core_type = #tpu.core_type<tc>, window_params = [{transform_indices = @transform_0, window_bounds = array<i64: 128, 462>}, {pipeline_mode = #tpu.pipeline_mode<synchronous>, transform_indices = @transform_1, window_bounds = array<i64: 462, 128>}, {pipeline_mode = #tpu.pipeline_mode<synchronous>, transform_indices = @transform_2, window_bounds = array<i64: 384, 128>}, {pipeline_mode = #tpu.pipeline_mode<synchronous>, transform_indices = @transform_3, window_bounds = array<i64: 128, 128>}, {pipeline_mode = #tpu.pipeline_mode<synchronous>, transform_indices = @transform_4, window_bounds = array<i64: 256, 128>}, {pipeline_mode = #tpu.pipeline_mode<synchronous>, transform_indices = @transform_5, window_bounds = array<i64: 192, 64>}, {pipeline_mode = #tpu.pipeline_mode<synchronous>, transform_indices = @transform_6, window_bounds = array<i64: 192, 64>}, {pipeline_mode = #tpu.pipeline_mode<synchronous>, transform_indices = @transform_7, window_bounds = array<i64: 896, 128>}, {pipeline_mode = #tpu.pipeline_mode<synchronous>, transform_indices = @transform_8, window_bounds = array<i64: 1, 128>}, {pipeline_mode = #tpu.pipeline_mode<synchronous>, transform_indices = @transform_9, window_bounds = array<i64: 1, 128>}, {pipeline_mode = #tpu.pipeline_mode<synchronous>, transform_indices = @transform_10, window_bounds = array<i64: 1, 128>}, {pipeline_mode = #tpu.pipeline_mode<synchronous>, transform_indices = @transform_11, window_bounds = array<i64: 1, 128>}, {transform_indices = @transform_12, window_bounds = array<i64: 128, 128>}]} {
    %c0 = arith.constant 0 : index
    %c0_0 = arith.constant 0 : index
    %0 = vector.load %arg1[%c0, %c0_0] : memref<128x462xbf16, #tpu.memory_space<vmem>>, vector<128x462xbf16>
    %c0_1 = arith.constant 0 : index
    %c0_2 = arith.constant 0 : index
    %1 = vector.load %arg2[%c0_1, %c0_2] : memref<462x128xbf16, #tpu.memory_space<vmem>>, vector<462x128xbf16>
    %cst = arith.constant dense<0.000000e+00> : vector<128x128xf32>
    %2 = tpu.matmul %0, %1, %cst {dimension_numbers = #tpu.dot_dimension_numbers<[1], [0], [0], [1], [0, 0, 1, 1], [], []>} : vector<128x462xbf16>, vector<462x128xbf16>, vector<128x128xf32> -> vector<128x128xf32>
    %c0_3 = arith.constant 0 : index
    %c0_4 = arith.constant 0 : index
    %3 = vector.load %arg9[%c0_3, %c0_4] : memref<1x128xf32, #tpu.memory_space<vmem>>, vector<1x128xf32>
    %4 = vector.broadcast %3 : vector<1x128xf32> to vector<128x128xf32>
    %5 = arith.addf %2, %4 : vector<128x128xf32>
    %cst_5 = arith.constant 0.000000e+00 : f32
    %6 = vector.broadcast %cst_5 : f32 to vector<128x128xf32>
    %7 = arith.maximumf %5, %6 : vector<128x128xf32>
    %8 = vector.shape_cast %7 : vector<128x128xf32> to vector<8x16x128xf32>
    %9 = vector.extract_strided_slice %8 {offsets = [0, 0, 0], sizes = [8, 8, 128], strides = [1, 1, 1]} : vector<8x16x128xf32> to vector<8x8x128xf32>
    %10 = vector.extract_strided_slice %8 {offsets = [0, 8, 0], sizes = [8, 8, 128], strides = [1, 1, 1]} : vector<8x16x128xf32> to vector<8x8x128xf32>
    %cst_6 = arith.constant 0.000000e+00 : f32
    %11 = vector.broadcast %cst_6 : f32 to vector<8x1x128xf32>
    %12 = vector.extract_strided_slice %10 {offsets = [0, 0, 0], sizes = [8, 7, 128], strides = [1, 1, 1]} : vector<8x8x128xf32> to vector<8x7x128xf32>
    %13 = tpu.concatenate %11, %12 in 1 : vector<8x1x128xf32>, vector<8x7x128xf32> -> vector<8x8x128xf32>
    %14 = vector.shape_cast %13 : vector<8x8x128xf32> to vector<64x128xf32>
    %15 = vector.shape_cast %9 : vector<8x8x128xf32> to vector<64x128xf32>
    %16 = vector.shape_cast %10 : vector<8x8x128xf32> to vector<64x128xf32>
    %17 = tpu.concatenate %14, %15, %16 in 1 : vector<64x128xf32>, vector<64x128xf32>, vector<64x128xf32> -> vector<64x384xf32>
    %18 = arith.truncf %17 : vector<64x384xf32> to vector<64x384xbf16>
    %c0_7 = arith.constant 0 : index
    %c0_8 = arith.constant 0 : index
    %19 = vector.load %arg3[%c0_7, %c0_8] : memref<384x128xbf16, #tpu.memory_space<vmem>>, vector<384x128xbf16>
    %cst_9 = arith.constant dense<0.000000e+00> : vector<64x128xf32>
    %20 = tpu.matmul %18, %19, %cst_9 {dimension_numbers = #tpu.dot_dimension_numbers<[1], [0], [0], [1], [0, 0, 1, 1], [], []>} : vector<64x384xbf16>, vector<384x128xbf16>, vector<64x128xf32> -> vector<64x128xf32>
    %c0_10 = arith.constant 0 : index
    %c0_11 = arith.constant 0 : index
    %21 = vector.load %arg10[%c0_10, %c0_11] : memref<1x128xf32, #tpu.memory_space<vmem>>, vector<1x128xf32>
    %22 = vector.broadcast %21 : vector<1x128xf32> to vector<64x128xf32>
    %23 = arith.addf %20, %22 : vector<64x128xf32>
    %cst_12 = arith.constant 0.000000e+00 : f32
    %24 = vector.broadcast %cst_12 : f32 to vector<64x128xf32>
    %25 = arith.maximumf %23, %24 : vector<64x128xf32>
    %26 = vector.shape_cast %25 : vector<64x128xf32> to vector<8x8x128xf32>
    %27 = vector.extract_strided_slice %26 {offsets = [0, 1, 0], sizes = [8, 7, 128], strides = [1, 1, 1]} : vector<8x8x128xf32> to vector<8x7x128xf32>
    %cst_13 = arith.constant 0.000000e+00 : f32
    %28 = vector.broadcast %cst_13 : f32 to vector<8x1x128xf32>
    %29 = tpu.concatenate %27, %28 in 1 : vector<8x7x128xf32>, vector<8x1x128xf32> -> vector<8x8x128xf32>
    %30 = vector.shape_cast %29 : vector<8x8x128xf32> to vector<64x128xf32>
    %31 = arith.truncf %25 : vector<64x128xf32> to vector<64x128xbf16>
    %c0_14 = arith.constant 0 : index
    %c0_15 = arith.constant 0 : index
    %32 = vector.load %arg4[%c0_14, %c0_15] : memref<128x128xbf16, #tpu.memory_space<vmem>>, vector<128x128xbf16>
    %cst_16 = arith.constant dense<0.000000e+00> : vector<64x128xf32>
    %33 = tpu.matmul %31, %32, %cst_16 {dimension_numbers = #tpu.dot_dimension_numbers<[1], [0], [0], [1], [0, 0, 1, 1], [], []>} : vector<64x128xbf16>, vector<128x128xbf16>, vector<64x128xf32> -> vector<64x128xf32>
    %c0_17 = arith.constant 0 : index
    %c0_18 = arith.constant 0 : index
    %34 = vector.load %arg11[%c0_17, %c0_18] : memref<1x128xf32, #tpu.memory_space<vmem>>, vector<1x128xf32>
    %35 = vector.broadcast %34 : vector<1x128xf32> to vector<64x128xf32>
    %36 = arith.addf %33, %35 : vector<64x128xf32>
    %cst_19 = arith.constant 0.000000e+00 : f32
    %37 = vector.broadcast %cst_19 : f32 to vector<64x128xf32>
    %38 = arith.maximumf %36, %37 : vector<64x128xf32>
    %39 = arith.truncf %38 : vector<64x128xf32> to vector<64x128xbf16>
    %40 = tpu.concatenate %25, %30 in 1 : vector<64x128xf32>, vector<64x128xf32> -> vector<64x256xf32>
    %41 = arith.truncf %40 : vector<64x256xf32> to vector<64x256xbf16>
    %c0_20 = arith.constant 0 : index
    %c0_21 = arith.constant 0 : index
    %42 = vector.load %arg5[%c0_20, %c0_21] : memref<256x128xbf16, #tpu.memory_space<vmem>>, vector<256x128xbf16>
    %cst_22 = arith.constant dense<0.000000e+00> : vector<64x128xf32>
    %43 = tpu.matmul %41, %42, %cst_22 {dimension_numbers = #tpu.dot_dimension_numbers<[1], [0], [0], [1], [0, 0, 1, 1], [], []>} : vector<64x256xbf16>, vector<256x128xbf16>, vector<64x128xf32> -> vector<64x128xf32>
    %c0_23 = arith.constant 0 : index
    %c0_24 = arith.constant 0 : index
    %44 = vector.load %arg11[%c0_23, %c0_24] : memref<1x128xf32, #tpu.memory_space<vmem>>, vector<1x128xf32>
    %45 = vector.broadcast %44 : vector<1x128xf32> to vector<64x128xf32>
    %46 = arith.addf %43, %45 : vector<64x128xf32>
    %cst_25 = arith.constant 0.000000e+00 : f32
    %47 = vector.broadcast %cst_25 : f32 to vector<64x128xf32>
    %48 = arith.maximumf %46, %47 : vector<64x128xf32>
    %49 = arith.truncf %48 : vector<64x128xf32> to vector<64x128xbf16>
    %c0_26 = arith.constant 0 : index
    %c0_27 = arith.constant 0 : index
    %50 = vector.load %arg6[%c0_26, %c0_27] : memref<192x64xbf16, #tpu.memory_space<vmem>>, vector<192x64xbf16>
    %cst_28 = arith.constant dense<0.000000e+00> : vector<192x128xf32>
    %51 = tpu.matmul %50, %39, %cst_28 {dimension_numbers = #tpu.dot_dimension_numbers<[1], [0], [0], [1], [0, 0, 1, 1], [], []>} : vector<192x64xbf16>, vector<64x128xbf16>, vector<192x128xf32> -> vector<192x128xf32>
    %c0_29 = arith.constant 0 : index
    %c0_30 = arith.constant 0 : index
    %52 = vector.load %arg7[%c0_29, %c0_30] : memref<192x64xbf16, #tpu.memory_space<vmem>>, vector<192x64xbf16>
    %cst_31 = arith.constant dense<0.000000e+00> : vector<192x128xf32>
    %53 = tpu.matmul %52, %49, %cst_31 {dimension_numbers = #tpu.dot_dimension_numbers<[1], [0], [0], [1], [0, 0, 1, 1], [], []>} : vector<192x64xbf16>, vector<64x128xbf16>, vector<192x128xf32> -> vector<192x128xf32>
    %54 = arith.addf %51, %53 : vector<192x128xf32>
    %55 = vector.shape_cast %54 : vector<192x128xf32> to vector<8x24x128xf32>
    %56 = vector.extract_strided_slice %55 {offsets = [0, 0, 0], sizes = [8, 16, 128], strides = [1, 1, 1]} : vector<8x24x128xf32> to vector<8x16x128xf32>
    %57 = vector.shape_cast %56 : vector<8x16x128xf32> to vector<128x128xf32>
    %58 = vector.extract_strided_slice %55 {offsets = [0, 1, 0], sizes = [8, 16, 128], strides = [1, 1, 1]} : vector<8x24x128xf32> to vector<8x16x128xf32>
    %59 = vector.shape_cast %58 : vector<8x16x128xf32> to vector<128x128xf32>
    %60 = vector.extract_strided_slice %55 {offsets = [0, 2, 0], sizes = [8, 16, 128], strides = [1, 1, 1]} : vector<8x24x128xf32> to vector<8x16x128xf32>
    %61 = vector.shape_cast %60 : vector<8x16x128xf32> to vector<128x128xf32>
    %62 = vector.extract_strided_slice %55 {offsets = [0, 3, 0], sizes = [8, 16, 128], strides = [1, 1, 1]} : vector<8x24x128xf32> to vector<8x16x128xf32>
    %63 = vector.shape_cast %62 : vector<8x16x128xf32> to vector<128x128xf32>
    %64 = vector.extract_strided_slice %55 {offsets = [0, 4, 0], sizes = [8, 16, 128], strides = [1, 1, 1]} : vector<8x24x128xf32> to vector<8x16x128xf32>
    %65 = vector.shape_cast %64 : vector<8x16x128xf32> to vector<128x128xf32>
    %66 = vector.extract_strided_slice %55 {offsets = [0, 5, 0], sizes = [8, 16, 128], strides = [1, 1, 1]} : vector<8x24x128xf32> to vector<8x16x128xf32>
    %67 = vector.shape_cast %66 : vector<8x16x128xf32> to vector<128x128xf32>
    %68 = vector.extract_strided_slice %55 {offsets = [0, 6, 0], sizes = [8, 16, 128], strides = [1, 1, 1]} : vector<8x24x128xf32> to vector<8x16x128xf32>
    %69 = vector.shape_cast %68 : vector<8x16x128xf32> to vector<128x128xf32>
    %70 = tpu.concatenate %57, %59, %61, %63, %65, %67, %69 in 1 : vector<128x128xf32>, vector<128x128xf32>, vector<128x128xf32>, vector<128x128xf32>, vector<128x128xf32>, vector<128x128xf32>, vector<128x128xf32> -> vector<128x896xf32>
    %71 = arith.truncf %70 : vector<128x896xf32> to vector<128x896xbf16>
    %c0_32 = arith.constant 0 : index
    %c0_33 = arith.constant 0 : index
    %72 = vector.load %arg8[%c0_32, %c0_33] : memref<896x128xbf16, #tpu.memory_space<vmem>>, vector<896x128xbf16>
    %cst_34 = arith.constant dense<0.000000e+00> : vector<128x128xf32>
    %73 = tpu.matmul %71, %72, %cst_34 {dimension_numbers = #tpu.dot_dimension_numbers<[1], [0], [0], [1], [0, 0, 1, 1], [], []>} : vector<128x896xbf16>, vector<896x128xbf16>, vector<128x128xf32> -> vector<128x128xf32>
    %c0_35 = arith.constant 0 : index
    %c0_36 = arith.constant 0 : index
    %74 = vector.load %arg12[%c0_35, %c0_36] : memref<1x128xf32, #tpu.memory_space<vmem>>, vector<1x128xf32>
    %75 = vector.broadcast %74 : vector<1x128xf32> to vector<128x128xf32>
    %76 = arith.addf %73, %75 : vector<128x128xf32>
    %c0_37 = arith.constant 0 : index
    %c0_38 = arith.constant 0 : index
    %77 = vector.load %arg13[%c0_37, %c0_38] : memref<128x128xf32, #tpu.memory_space<vmem>>, vector<128x128xf32>
    tpu.vector_store %arg13[%c0_37, %c0_38], %76 {strides = array<i32>} : memref<128x128xf32, #tpu.memory_space<vmem>>, vector<128x128xf32>,
    return
  }
  func.func @transform_0(%arg0: i32) -> (i32, i32) {
    %c0_i32 = arith.constant 0 : i32
    %c0_i32_0 = arith.constant 0 : i32
    return %arg0, %c0_i32 : i32, i32
  }
  func.func @transform_1(%arg0: i32) -> (i32, i32) {
    %c0_i32 = arith.constant 0 : i32
    %c0_i32_0 = arith.constant 0 : i32
    %c0_i32_1 = arith.constant 0 : i32
    return %c0_i32, %c0_i32_0 : i32, i32
  }
  func.func @transform_2(%arg0: i32) -> (i32, i32) {
    %c0_i32 = arith.constant 0 : i32
    %c0_i32_0 = arith.constant 0 : i32
    %c0_i32_1 = arith.constant 0 : i32
    return %c0_i32, %c0_i32_0 : i32, i32
  }
  func.func @transform_3(%arg0: i32) -> (i32, i32) {
    %c0_i32 = arith.constant 0 : i32
    %c0_i32_0 = arith.constant 0 : i32
    %c0_i32_1 = arith.constant 0 : i32
    return %c0_i32, %c0_i32_0 : i32, i32
  }
  func.func @transform_4(%arg0: i32) -> (i32, i32) {
    %c0_i32 = arith.constant 0 : i32
    %c0_i32_0 = arith.constant 0 : i32
    %c0_i32_1 = arith.constant 0 : i32
    return %c0_i32, %c0_i32_0 : i32, i32
  }
  func.func @transform_5(%arg0: i32) -> (i32, i32) {
    %c0_i32 = arith.constant 0 : i32
    %c0_i32_0 = arith.constant 0 : i32
    %c0_i32_1 = arith.constant 0 : i32
    return %c0_i32, %c0_i32_0 : i32, i32
  }
  func.func @transform_6(%arg0: i32) -> (i32, i32) {
    %c0_i32 = arith.constant 0 : i32
    %c0_i32_0 = arith.constant 0 : i32
    %c0_i32_1 = arith.constant 0 : i32
    return %c0_i32, %c0_i32_0 : i32, i32
  }
  func.func @transform_7(%arg0: i32) -> (i32, i32) {
    %c0_i32 = arith.constant 0 : i32
    %c0_i32_0 = arith.constant 0 : i32
    %c0_i32_1 = arith.constant 0 : i32
    return %c0_i32, %c0_i32_0 : i32, i32
  }
  func.func @transform_8(%arg0: i32) -> (i32, i32) {
    %c0_i32 = arith.constant 0 : i32
    %c0_i32_0 = arith.constant 0 : i32
    %c0_i32_1 = arith.constant 0 : i32
    return %c0_i32, %c0_i32_0 : i32, i32
  }
  func.func @transform_9(%arg0: i32) -> (i32, i32) {
    %c0_i32 = arith.constant 0 : i32
    %c0_i32_0 = arith.constant 0 : i32
    %c0_i32_1 = arith.constant 0 : i32
    return %c0_i32, %c0_i32_0 : i32, i32
  }
  func.func @transform_10(%arg0: i32) -> (i32, i32) {
    %c0_i32 = arith.constant 0 : i32
    %c0_i32_0 = arith.constant 0 : i32
    %c0_i32_1 = arith.constant 0 : i32
    return %c0_i32, %c0_i32_0 : i32, i32
  }
  func.func @transform_11(%arg0: i32) -> (i32, i32) {
    %c0_i32 = arith.constant 0 : i32
    %c0_i32_0 = arith.constant 0 : i32
    %c0_i32_1 = arith.constant 0 : i32
    return %c0_i32, %c0_i32_0 : i32, i32
  }
  func.func @transform_12(%arg0: i32) -> (i32, i32) {
    %c0_i32 = arith.constant 0 : i32
    %c0_i32_0 = arith.constant 0 : i32
    return %arg0, %c0_i32 : i32, i32
  }
}

</mosaic_0001>

<bundles_post_ra>
// kernel: generator_resnet_forward.1
= control target key start
LH: loop header
LB: loop body
LE: loop exit
PB: predicated region body
PF: predicated region fallthrough
CT: control target
= control target key end

     0   :  { %s4842_s21 = smov 0   ;;  %s6184_s0 = inlined_call_operand.vmem [shape: bf16[256,462], index: 0, kind: input, shape index: {}]   ;;  %s6185_s1 = inlined_call_operand.vmem [shape: bf16[462,128], index: 1, kind: input, shape index: {}]   ;;  %s6186_s2 = inlined_call_operand.vmem [shape: bf16[384,128], index: 2, kind: input, shape index: {}]   ;;  %s6187_s3 = inlined_call_operand.vmem [shape: bf16[128,128], index: 3, kind: input, shape index: {}]   ;;  %s6188_s4 = inlined_call_operand.vmem [shape: bf16[256,128], index: 4, kind: input, shape index: {}]   ;;  %s6189_s5 = inlined_call_operand.vmem [shape: bf16[192,64], index: 5, kind: input, shape index: {}]   ;;  %s6190_s6 = inlined_call_operand.vmem [shape: bf16[192,64], index: 6, kind: input, shape index: {}]   ;;  %s6191_s7 = inlined_call_operand.vmem [shape: bf16[896,128], index: 7, kind: input, shape index: {}]   ;;  %s6192_s8 = inlined_call_operand.vmem [shape: f32[1,128], index: 8, kind: input, shape index: {}]   ;;  %s6193_s9 = inlined_call_operand.vmem [shape: f32[1,128], index: 9, kind: input, shape index: {}]   ;;  %s6194_s10 = inlined_call_operand.vmem [shape: f32[1,128], index: 10, kind: input, shape index: {}]   ;;  %s6195_s11 = inlined_call_operand.vmem [shape: f32[1,128], index: 11, kind: input, shape index: {}]   ;;  %s6196_s12 = inlined_call_operand.vmem [shape: f32[256,128], index: 12, kind: output, shape index: {}]  }
   0x1 LB: > { %s3692_s22 = sadd.s32 4294967295, %s4774_s21   ;;  %p3696_p0 = scmp.ge.s32.totalorder %s4774_s21, 1  ;;  %s4774_s21 = sphi %s4842_s21, %s22_s21  }
   0x2   : > { %p364_p1 = scmp.lt.s32.totalorder %s4774_s21, 3 }
   0x4   : > { %p365_p2 = pnand %p3696_p0, %p364_p1 }
   0x6   : > { %368 = sbr.rel (%p365_p2) target bundleno = 1418 (0x58a), region = 68 }
   0xd   : > { %v4563_v0 = vld [vmem:[%s6185_s1 + $0x80] sm:$0xff]   ;;  %v4776_v1 = vmov 0   ;;  %v4564_v2 = vld [vmem:[%s6185_s1 + $0x88] sm:$0xff]   ;;  %v4565_v5 = vld [vmem:[%s6185_s1 + $0x90] sm:$0xff]   ;;  %s3697_s27 = sshll.u32 %s3692_s22, 4  ;;  %vm843_vm0 = vcmask 637952  }
   0xe   : > { %969 = vmatprep.subr.bf16.mxu1 %v4776_v1  ;;  %v4566_v3 = vld [vmem:[%s6185_s1 + $0x40] sm:$0xff]   ;;  %v4569_v6 = vld [vmem:[%s6185_s1 + $0x48] sm:$0xff]   ;;  %v4568_v8 = vld [vmem:[%s6185_s1 + $0x98] sm:$0xff]   ;;  %p408_p3 = scmp.lt.s32.totalorder %s3697_s27, 31  ;;  %vm868_vm1 = vcmask 1046528   ;;  %vm1106_vm2 = vcmask 1040384  }
   0xf   : > { %970 = vmatpush1.bf16.msra.mxu1 %v4563_v0  ;;  %v4567_v4 = vld [vmem:[%s6185_s1] sm:$0xff]   ;;  %3962 = vmatprep.subr.bf16.mxu0 %v4566_v3  ;;  %v4570_v7 = vld [vmem:[%s6185_s1 + $0x8] sm:$0xff]   ;;  %v4572_v9 = vld [vmem:[%s6185_s1 + $0x50] sm:$0xff]   ;;  %vm1965_vm6 = vcmask 523264   ;;  %vm2493_vm7 = vcmask 1044480   ;;  %vm2436_vm8 = vcmask 1045504  }
  0x10   : > { %971 = vmatprep.subr.bf16.mxu1 %v4776_v1  ;;  %3963 = vmatpush3.bf16.msra.mxu0 %v4567_v4  ;;  %v4573_v10 = vld [vmem:[%s6185_s1 + $0x10] sm:$0xff]   ;;  %v4575_v11 = vld [vmem:[%s6185_s1 + $0x58] sm:$0xff]   ;;  %v4571_v12 = vld [vmem:[%s6185_s1 + $0xa0] sm:$0xff]   ;;  %s6238_s27 = smov (!%p408_p3, %s3697_s27), 31  ;;  %vm2607_vm9 = vcmask 1042432   ;;  %vm2664_vm10 = vcmask 1041408  }
  0x11   : > { %3964 = vmatprep.subr.bf16.mxu0 %v4569_v6  ;;  %v4576_v13 = vld [vmem:[%s6185_s1 + $0x18] sm:$0xff]   ;;  %v4578_v14 = vld [vmem:[%s6185_s1 + $0x60] sm:$0xff]   ;;  %v4574_v15 = vld [vmem:[%s6185_s1 + $0xa8] sm:$0xff]   ;;  %s3961_s30 = sshll.u32 %s6238_s27, 4  ;;  %vm2550_vm11 = vcmask 1043456   ;;  %s3701_s13 = sshll.u32 %s6238_s27, 3 }
  0x12   : > { %v4579_v16 = vld [vmem:[%s6185_s1 + $0x20] sm:$0xff]   ;;  %v4581_v17 = vld [vmem:[%s6185_s1 + $0x68] sm:$0xff]   ;;  %v4577_v18 = vld [vmem:[%s6185_s1 + $0xb0] sm:$0xff]   ;;  %s4926_s18 = scalar_lea.vmem %s6184_s0, %s3961_s30  ;;  %s6148_s16 = scalar_lea.vmem %s6196_s12, %s3701_s13 }
  0x13   : > { %972 = vmatpush1.bf16.msra.mxu1 %v4564_v2  ;;  %v4582_v19 = vld [vmem:[%s6185_s1 + $0x28] sm:$0xff]   ;;  %v4584_v20 = vld [vmem:[%s6185_s1 + $0x70] sm:$0xff]   ;;  %v4580_v21 = vld [vmem:[%s6185_s1 + $0xb8] sm:$0xff]  }
  0x14   : > { %973 = vmatprep.subr.bf16.mxu1 %v4776_v1  ;;  %3965 = vmatpush3.bf16.msra.mxu0 %v4570_v7  ;;  %v4585_v22 = vld [vmem:[%s6185_s1 + $0x30] sm:$0xff]   ;;  %v4587_v23 = vld [vmem:[%s6185_s1 + $0x78] sm:$0xff]   ;;  %v4583_v25 = vld [vmem:[%s6185_s1 + $0xc0] sm:$0xff]  }
  0x15   : > { %3966 = vmatprep.subr.bf16.mxu0 %v4572_v9  ;;  %v4592_v24 = vld [vmem:[%s4926_s18 + $0x4] ss:$16 sps:$4 sm:$0xff]   ;;  %v4588_v26 = vld [vmem:[%s6185_s1 + $0x38] sm:$0xff]   ;;  %v4586_v28 = vld [vmem:[%s6185_s1 + $0xc8] sm:$0xff]  }
  0x16   : > { %904 = vmatprep.mubr.bf16.mxu0 %v4592_v24  ;;  %v4599_v27 = vld [vmem:[%s4926_s18 + $0xc] ss:$16 sps:$4 sm:$0xff]   ;;  %v4590_v29 = vld [vmem:[%s4926_s18] ss:$16 sps:$4 sm:$0xff]   ;;  %v4595_v30 = vld [vmem:[%s4926_s18 + $0x24] ss:$16 sps:$4 sm:$0xff]  }
  0x17   : > { %974 = vmatpush1.bf16.msra.mxu1 %v4565_v5  ;;  %3764 = vmatprep.mubr.msk.bf16.mxu1 %vm843_vm0, %v4599_v27  ;;  %v4589_v31 = vld [vmem:[%s6185_s1 + $0xd0] sm:$0xff]   ;;  %v4593_v32 = vld [vmem:[%s6185_s1 + $0xd8] sm:$0xff]   ;;  %v4594_v35 = vld [vmem:[%s6185_s1 + $0xe0] sm:$0x7f]  }
  0x18   : > { %975 = vmatprep.subr.bf16.mxu1 %v4776_v1  ;;  %3967 = vmatpush3.bf16.msra.mxu0 %v4573_v10  ;;  %v4600_v33 = vld [vmem:[%s4926_s18 + $0x20] ss:$16 sps:$4 sm:$0xff]   ;;  %v4601_v34 = vld [vmem:[%s4926_s18 + $0x44] ss:$16 sps:$4 sm:$0xff]   ;;  %v870_v36 = vsel %vm868_vm1, %v4594_v35, 0  ;;  %v4643_v44 = vld [vmem:[%s6186_s2 + $0x48] sm:$0xff]  }
  0x19   : > { %3968 = vmatprep.subr.bf16.mxu0 %v4575_v11  ;;  %v4597_v37 = vld [vmem:[%s4926_s18 + $0x8] ss:$16 sps:$4 sm:$0xff]   ;;  %v4603_v38 = vld [vmem:[%s4926_s18 + $0x2c] ss:$16 sps:$4 sm:$0xff]   ;;  %v4605_v39 = vld [vmem:[%s4926_s18 + $0x40] ss:$16 sps:$4 sm:$0xff]  }
  0x1a   : > { %v4607_v40 = vld [vmem:[%s4926_s18 + $0x64] ss:$16 sps:$4 sm:$0xff]   ;;  %v4606_v45 = vld [vmem:[%s4926_s18 + $0x28] ss:$16 sps:$4 sm:$0xff]   ;;  %v4611_v46 = vld [vmem:[%s4926_s18 + $0x60] ss:$16 sps:$4 sm:$0xff]  }
  0x1b   : > { %976 = vmatpush1.bf16.msra.mxu1 %v4568_v8  ;;  %v4640_v41 = vld [vmem:[%s6186_s2 + $0x40] sm:$0xff]   ;;  %v4644_v47 = vld [vmem:[%s6186_s2 + $0x8] sm:$0xff]   ;;  %v4646_v5 = vld [vmem:[%s6186_s2 + $0x50] sm:$0xff]  }
  0x1c   : > { %977 = vmatprep.subr.bf16.mxu1 %v4776_v1  ;;  %3969 = vmatpush3.bf16.msra.mxu0 %v4576_v13  ;;  %v4641_v42 = vld [vmem:[%s6186_s2] sm:$0xff]   ;;  %v4609_v48 = vld [vmem:[%s4926_s18 + $0x4c] ss:$16 sps:$4 sm:$0xff]   ;;  %v4612_v50 = vld [vmem:[%s4926_s18 + $0x48] ss:$16 sps:$4 sm:$0xff]  }
  0x1d   : > { %3970 = vmatprep.subr.bf16.mxu0 %v4578_v14  ;;  %v4642_v43 = vld [vmem:[%s6186_s2 + $0x80] sm:$0xff]   ;;  %v4615_v52 = vld [vmem:[%s4926_s18 + $0x6c] ss:$16 sps:$4 sm:$0xff]   ;;  %v4618_v54 = vld [vmem:[%s4926_s18 + $0x68] ss:$16 sps:$4 sm:$0xff]  }
  0x1e   : > { %v4613_v49 = vld [vmem:[%s4926_s18 + $0x84] ss:$16 sps:$4 sm:$0xff]   ;;  %v4617_v51 = vld [vmem:[%s4926_s18 + $0x80] ss:$16 sps:$4 sm:$0xff]   ;;  %v4621_v56 = vld [vmem:[%s4926_s18 + $0x8c] ss:$16 sps:$4 sm:$0xff]  }
  0x1f   : > { %978 = vmatpush1.bf16.msra.mxu1 %v4571_v12  ;;  %v4619_v53 = vld [vmem:[%s4926_s18 + $0xa4] ss:$16 sps:$4 sm:$0xff]   ;;  %v4623_v55 = vld [vmem:[%s4926_s18 + $0xa0] ss:$16 sps:$4 sm:$0xff]   ;;  %v4624_v58 = vld [vmem:[%s4926_s18 + $0x88] ss:$16 sps:$4 sm:$0xff]  }
  0x20   : > { %979 = vmatprep.subr.bf16.mxu1 %v4776_v1  ;;  %3971 = vmatpush3.bf16.msra.mxu0 %v4579_v16  ;;  %v4625_v57 = vld [vmem:[%s4926_s18 + $0xc4] ss:$16 sps:$4 sm:$0xff]   ;;  %v4629_v59 = vld [vmem:[%s4926_s18 + $0xc0] ss:$16 sps:$4 sm:$0xff]   ;;  %v4627_v60 = vld [vmem:[%s4926_s18 + $0xac] ss:$16 sps:$4 sm:$0xff]  }
  0x21   : > { %3972 = vmatprep.subr.bf16.mxu0 %v4581_v17  ;;  %v4631_v61 = vld [vmem:[%s4926_s18 + $0xe4] ss:$16 sps:$4 sm:$0xff]   ;;  %v4630_v62 = vld [vmem:[%s4926_s18 + $0xa8] ss:$16 sps:$4 sm:$0xff]   ;;  %v4635_v63 = vld [vmem:[%s4926_s18 + $0xe0] ss:$16 sps:$4 sm:$0xff]  }
  0x22   : > { %v4633_v0 = vld [vmem:[%s4926_s18 + $0xcc] ss:$16 sps:$4 sm:$0xff]   ;;  %v4639_v3 = vld [vmem:[%s4926_s18 + $0xe8] ss:$16 sps:$4 sm:$0xff]   ;;  %v4647_v6 = vld [vmem:[%s6186_s2 + $0x10] sm:$0xff]  }
  0x23   : > { %980 = vmatpush1.bf16.msra.mxu1 %v4574_v15  ;;  %v4637_v2 = vld [vmem:[%s4926_s18 + $0xec] ss:$16 sps:$4 sm:$0xff]   ;;  %v4651_v9 = vld [vmem:[%s6186_s2 + $0x60] sm:$0xff]   ;;  %v4650_v11 = vld [vmem:[%s6186_s2 + $0x90] sm:$0xff]  }
  0x24   : > { %981 = vmatprep.subr.bf16.mxu1 %v4776_v1  ;;  %3973 = vmatpush3.bf16.msra.mxu0 %v4582_v19  ;;  %v4645_v4 = vld [vmem:[%s6186_s2 + $0x88] sm:$0xff]   ;;  %v4648_v7 = vld [vmem:[%s6186_s2 + $0x58] sm:$0xff]   ;;  %v4652_v10 = vld [vmem:[%s6186_s2 + $0x20] sm:$0xff]  }
  0x25   : > { %3974 = vmatprep.subr.bf16.mxu0 %v4584_v20  ;;  %v4649_v8 = vld [vmem:[%s6186_s2 + $0x18] sm:$0xff]   ;;  %v4653_v12 = vld [vmem:[%s6186_s2 + $0x68] sm:$0xff]   ;;  %v4656_v14 = vld [vmem:[%s6186_s2 + $0x70] sm:$0xff]  }
  0x26   : > { %v4654_v13 = vld [vmem:[%s6186_s2 + $0x28] sm:$0xff]   ;;  %v4657_v15 = vld [vmem:[%s6186_s2 + $0x30] sm:$0xff]   ;;  %v4655_v16 = vld [vmem:[%s6186_s2 + $0x98] sm:$0xff]  }
  0x27   : > { %982 = vmatpush1.bf16.msra.mxu1 %v4577_v18  ;;  %v4658_v17 = vld [vmem:[%s6186_s2 + $0x78] sm:$0xff]   ;;  %v4660_v19 = vld [vmem:[%s6186_s2 + $0xa0] sm:$0xff]   ;;  %v4661_v20 = vld [vmem:[%s6186_s2 + $0xa8] sm:$0xff]  }
  0x28   : > { %983 = vmatprep.subr.bf16.mxu1 %v4776_v1  ;;  %3975 = vmatpush3.bf16.msra.mxu0 %v4585_v22  ;;  %v4659_v18 = vld [vmem:[%s6186_s2 + $0x38] sm:$0xff]   ;;  %v5077_v24 = vld [vmem:[%s6187_s3] sm:$0xff]   ;;  %vm3797_vm3 = vmneg %vm1106_vm2 }
  0x29   : > { %3976 = vmatprep.subr.bf16.mxu0 %v4587_v23  ;;  %v4663_v22 = vld [vmem:[%s6186_s2 + $0xb8] sm:$0xff]   ;;  %v4664_v23 = vld [vmem:[%s6188_s4 + $0x40] sm:$0xff]   ;;  %vm5090_vm4 = vmpackc.low %vm3797_vm3, %vm3797_vm3 }
  0x2a   : > { %vm5191_vm5 = vmpackc.low %vm868_vm1, %vm868_vm1 }
  0x2b   : > { %984 = vmatpush1.bf16.msra.mxu1 %v4580_v21  ;;  %v4662_v21 = vld [vmem:[%s6186_s2 + $0xb0] sm:$0xff]  }
  0x2c   : > { %985 = vmatprep.subr.bf16.mxu1 %v4776_v1  ;;  %3977 = vmatpush3.bf16.msra.mxu0 %v4588_v26 }
  0x2d   : > { %4026 = vmatprep.subr.bf16.mxu0 %v4640_v41 }
  0x2f   : > { %986 = vmatpush1.bf16.msra.mxu1 %v4583_v25  ;;  %905 = vmatmul.mubr.bf16.vlgmr.msra.gmra.mrb[0].mxu0 %v4590_v29 }
  0x30   : > { %987 = vmatprep.subr.bf16.mxu1 %v4776_v1  ;;  %912 = vmatprep.mubr.bf16.mxu0 %v4595_v30 }
  0x31   : > { %4027 = vmatpush3.bf16.msra.mxu0 %v4641_v42 }
  0x32   : > { %4028 = vmatprep.subr.bf16.mxu0 %v4643_v44 }
  0x33   : > { %988 = vmatpush1.bf16.msra.mxu1 %v4586_v28 }
  0x34   : > { %989 = vmatprep.subr.bf16.mxu1 %v4776_v1 }
  0x35   : > { %4029 = vmatpush3.bf16.msra.mxu0 %v4644_v47 }
  0x36   : > { %4030 = vmatprep.subr.bf16.mxu0 %v4646_v5 }
  0x37   : > { %990 = vmatpush1.bf16.msra.mxu1 %v4589_v31  ;;  %913 = vmatmul.mubr.bf16.gmra.mrb[4].mxu0 %v4600_v33  ;;  %v5083_v33 = vld [vmem:[%s6192_s8] ss:$0 sm:$0xff] }
  0x38   : > { %991 = vmatprep.subr.bf16.mxu1 %v4776_v1  ;;  %920 = vmatprep.mubr.bf16.mxu0 %v4601_v34 }
  0x39   : > { %4031 = vmatpush3.bf16.msra.mxu0 %v4647_v6 }
  0x3a   : > { %4032 = vmatprep.subr.bf16.mxu0 %v4648_v7 }
  0x3b   : > { %992 = vmatpush1.bf16.msra.mxu1 %v4593_v32 }
  0x3c   : > { %993 = vmatprep.subr.bf16.mxu1 %v4776_v1  ;;  %v4636_v1 = vld [vmem:[%s4926_s18 + $0xc8] ss:$16 sps:$4 sm:$0xff]  }
  0x3d   : > { %4033 = vmatpush3.bf16.msra.mxu0 %v4649_v8 }
  0x3e   : > { %4034 = vmatprep.subr.bf16.mxu0 %v4651_v9 }
  0x3f   : > { %994 = vmatpush1.bf16.msra.mxu1 %v870_v36  ;;  %921 = vmatmul.mubr.bf16.gmra.mrb[8].mxu0 %v4605_v39 }
  0x40   : > { %928 = vmatprep.mubr.bf16.mxu0 %v4607_v40  ;;  %4370 = vmatprep.subr.bf16.mxu1 %v4642_v43 }
  0x41   : > { %4035 = vmatpush3.bf16.msra.mxu0 %v4652_v10 }
  0x42   : > { %1002 = vmatmul.mubr.bf16.vlgmr.msra.gmra.mrb[0].mxu1 %v4597_v37  ;;  %4036 = vmatprep.subr.bf16.mxu0 %v4653_v12  ;;  %v4672_v12 = vld [vmem:[%s6187_s3 + $0x10] sm:$0xff]  }
  0x43   : > { %3765 = vmatprep.mubr.msk.bf16.mxu1 %vm843_vm0, %v4603_v38  ;;  %4371 = vmatpush3.bf16.msra.mxu1 %v4642_v43 }
  0x44   : > { %4372 = vmatprep.subr.bf16.mxu1 %v4645_v4 }
  0x45   : > { %4037 = vmatpush3.bf16.msra.mxu0 %v4654_v13 }
  0x46   : > { %4038 = vmatprep.subr.bf16.mxu0 %v4656_v14 }
  0x47   : > { %929 = vmatmul.mubr.bf16.gmra.mrb[12].mxu0 %v4611_v46  ;;  %4373 = vmatpush3.bf16.msra.mxu1 %v4645_v4 }
  0x48   : > { %936 = vmatprep.mubr.bf16.mxu0 %v4613_v49  ;;  %4374 = vmatprep.subr.bf16.mxu1 %v4650_v11 }
  0x49   : > { %4039 = vmatpush3.bf16.msra.mxu0 %v4657_v15 }
  0x4a   : > { %1010 = vmatmul.mubr.bf16.gmra.mrb[4].mxu1 %v4606_v45  ;;  %4040 = vmatprep.subr.bf16.mxu0 %v4658_v17 }
  0x4b   : > { %3766 = vmatprep.mubr.msk.bf16.mxu1 %vm843_vm0, %v4609_v48  ;;  %4375 = vmatpush3.bf16.msra.mxu1 %v4650_v11 }
  0x4c   : > { %4376 = vmatprep.subr.bf16.mxu1 %v4655_v16 }
  0x4d   : > { %4041 = vmatpush3.bf16.msra.mxu0 %v4659_v18 }
  0x4e   : > { %4394 = vmatprep.subr.bf16.mxu0 %v5077_v24 }
  0x4f   : > { %937 = vmatmul.mubr.bf16.gmra.mrb[16].mxu0 %v4617_v51  ;;  %4377 = vmatpush3.bf16.msra.mxu1 %v4655_v16 }
  0x50   : > { %944 = vmatprep.mubr.bf16.mxu0 %v4619_v53  ;;  %4378 = vmatprep.subr.bf16.mxu1 %v4660_v19 }
  0x52   : > { %1018 = vmatmul.mubr.bf16.gmra.mrb[8].mxu1 %v4612_v50 }
  0x53   : > { %3767 = vmatprep.mubr.msk.bf16.mxu1 %vm843_vm0, %v4615_v52  ;;  %4379 = vmatpush3.bf16.msra.mxu1 %v4660_v19 }
  0x54   : > { %4380 = vmatprep.subr.bf16.mxu1 %v4661_v20 }
  0x57   : > { %945 = vmatmul.mubr.bf16.gmra.mrb[20].mxu0 %v4623_v55  ;;  %4381 = vmatpush3.bf16.msra.mxu1 %v4661_v20 }
  0x58   : > { %952 = vmatprep.mubr.bf16.mxu0 %v4625_v57  ;;  %4382 = vmatprep.subr.bf16.mxu1 %v4662_v21 }
  0x5a   : > { %1026 = vmatmul.mubr.bf16.gmra.mrb[12].mxu1 %v4618_v54 }
  0x5b   : > { %3768 = vmatprep.mubr.msk.bf16.mxu1 %vm843_vm0, %v4621_v56  ;;  %4383 = vmatpush3.bf16.msra.mxu1 %v4662_v21 }
  0x5c   : > { %4384 = vmatprep.subr.bf16.mxu1 %v4663_v22 }
  0x5f   : > { %953 = vmatmul.mubr.bf16.gmra.mrb[24].mxu0 %v4629_v59  ;;  %4385 = vmatpush3.bf16.msra.mxu1 %v4663_v22 }
  0x60   : > { %960 = vmatprep.mubr.bf16.mxu0 %v4631_v61  ;;  %4090 = vmatprep.subr.bf16.mxu1 %v4664_v23 }
  0x62   : > { %1034 = vmatmul.mubr.bf16.gmra.mrb[16].mxu1 %v4624_v58 }
  0x63   : > { %3769 = vmatprep.mubr.msk.bf16.mxu1 %vm843_vm0, %v4627_v60 }
  0x67   : > { %961 = vmatmul.mubr.bf16.gmra.mrb[28].mxu0 %v4635_v63 }
  0x6a   : > { %1042 = vmatmul.mubr.bf16.gmra.mrb[20].mxu1 %v4630_v62 }
  0x6b   : > { %3770 = vmatprep.mubr.msk.bf16.mxu1 %vm843_vm0, %v4633_v0 }
  0x72   : > { %1050 = vmatmul.mubr.bf16.gmra.mrb[24].mxu1 %v4636_v1 }
  0x73   : > { %3771 = vmatprep.mubr.msk.bf16.mxu1 %vm843_vm0, %v4637_v2 }
  0x7a   : > { %1058 = vmatmul.mubr.bf16.gmra.mrb[28].mxu1 %v4639_v3 }
 0x102   : > { %v3978_v25 = vpop.f32.mrb[0].mxu0 }
 0x103   : > { %v3979_v26 = vpop.f32.mrb[1].mxu0 }
 0x104   : > { %v3980_v27 = vadd.f32 %v3979_v26, %v3978_v25  ;;  %v3981_v28 = vpop.f32.mrb[2].mxu0 }
 0x105   : > { %v3982_v29 = vpop.f32.mrb[3].mxu0 }
 0x106   : > { %v3983_v30 = vadd.f32 %v3982_v29, %v3981_v28  ;;  %v907_v38 = vadd.f32 %v3980_v27, %v5083_v33 }
 0x108   : > { %v910_v43 = vadd.f32 %v3983_v30, %v5083_v33 }
 0x10a   : > { %v3984_v31 = vpop.f32.mrb[4].mxu0 }
 0x10b   : > { %v3985_v32 = vpop.f32.mrb[5].mxu0 }
 0x10c   : > { %v3986_v34 = vadd.f32 %v3985_v32, %v3984_v31  ;;  %v3987_v35 = vpop.f32.mrb[6].mxu0 }
 0x10d   : > { %v3988_v36 = vpop.f32.mrb[7].mxu0 }
 0x10e   : > { %v3989_v37 = vadd.f32 %v3988_v36, %v3987_v35  ;;  %v915_v52 = vadd.f32 %v3986_v34, %v5083_v33 }
 0x110   : > { %v918_v57 = vadd.f32 %v3989_v37, %v5083_v33 }
 0x112   : > { %v3990_v40 = vpop.f32.mrb[8].mxu0 }
 0x113   : > { %v3991_v44 = vpop.f32.mrb[9].mxu0 }
 0x114   : > { %v3992_v46 = vadd.f32 %v3991_v44, %v3990_v40  ;;  %v3993_v47 = vpop.f32.mrb[10].mxu0 }
 0x115   : > { %v1003_v39 = vpop.f32.mrb[0].mxu1  ;;  %v3994_v50 = vpop.f32.mrb[11].mxu0 }
 0x116   : > { %v1004_v41 = vadd.f32 %v1003_v39, %v907_v38  ;;  %v1005_v42 = vpop.f32.mrb[1].mxu1  ;;  %v3995_v51 = vadd.f32 %v3994_v50, %v3993_v47  ;;  %v923_v7 = vadd.f32 %v3992_v46, %v5083_v33  ;;  %v4665_v47 = vld [vmem:[%s6188_s4] sm:$0xff]  }
 0x117   : > { %v1006_v45 = vpop.f32.mrb[2].mxu1 }
 0x118   : > { %v1007_v48 = vadd.f32 %v1006_v45, %v910_v43  ;;  %v1008_v49 = vpop.f32.mrb[3].mxu1  ;;  %v1066_v62 = vmax.f32 %v1004_v41, 0.0  ;;  %v926_v17 = vadd.f32 %v3995_v51, %v5083_v33  ;;  %v4667_v51 = vld [vmem:[%s6188_s4 + $0x48] sm:$0xff]  }
 0x11a   : > { %v3996_v54 = vpop.f32.mrb[12].mxu0  ;;  %v1067_v63 = vmax.f32 %v1007_v48, 0.0 }
 0x11b   : > { %v3997_v58 = vpop.f32.mrb[13].mxu0 }
 0x11c   : > { %v3998_v60 = vadd.f32 %v3997_v58, %v3996_v54  ;;  %v3999_v61 = vpop.f32.mrb[14].mxu0  ;;  %v1090_v8 = vrot.slane %v1067_v63, 7 }
 0x11d   : > { %v1011_v53 = vpop.f32.mrb[4].mxu1  ;;  %v4000_v3 = vpop.f32.mrb[15].mxu0 }
 0x11e   : > { %v1012_v55 = vadd.f32 %v1011_v53, %v915_v52  ;;  %v1013_v56 = vpop.f32.mrb[5].mxu1  ;;  %v4001_v4 = vadd.f32 %v4000_v3, %v3999_v61  ;;  %v931_v27 = vadd.f32 %v3998_v60, %v5083_v33 }
 0x11f   : > { %v1014_v59 = vpop.f32.mrb[6].mxu1 }
 0x120   : > { %v1068_v0 = vmax.f32 %v1012_v55, 0.0  ;;  %v1015_v1 = vadd.f32 %v1014_v59, %v918_v57  ;;  %v1016_v2 = vpop.f32.mrb[7].mxu1  ;;  %v934_v32 = vadd.f32 %v4001_v4, %v5083_v33 }
 0x122   : > { %v1116_v5 = vpack.c.bf16 %v1068_v0, %v1066_v62  ;;  %v1069_v6 = vmax.f32 %v1015_v1, 0.0  ;;  %v4002_v13 = vpop.f32.mrb[16].mxu0 }
 0x123   : > { %v4003_v18 = vpop.f32.mrb[17].mxu0 }
 0x124   : > { %v1091_v9 = vrot.slane %v1069_v6, 7  ;;  %v1117_v10 = vpack.c.bf16 %v1069_v6, %v1067_v63  ;;  %1358 = vmatprep.mubr.bf16.mxu0 %v1116_v5  ;;  %v4004_v20 = vadd.f32 %v4003_v18, %v4002_v13  ;;  %v4005_v21 = vpop.f32.mrb[18].mxu0 }
 0x125   : > { %v1019_v11 = vpop.f32.mrb[8].mxu1  ;;  %v4006_v25 = vpop.f32.mrb[19].mxu0 }
 0x126   : > { %v3800_v14 = vpack.c.bf16 %v1091_v9, %v1090_v8  ;;  %v1020_v15 = vadd.f32 %v1019_v11, %v923_v7  ;;  %v1021_v16 = vpop.f32.mrb[9].mxu1  ;;  %4386 = vmatprep.mubr.bf16.mxu1 %v1117_v10  ;;  %v4007_v26 = vadd.f32 %v4006_v25, %v4005_v21  ;;  %v939_v46 = vadd.f32 %v4004_v20, %v5083_v33 }
 0x127   : > { %v1022_v19 = vpop.f32.mrb[10].mxu1 }
 0x128   : > { %v1023_v22 = vadd.f32 %v1022_v19, %v926_v17  ;;  %v1024_v23 = vpop.f32.mrb[11].mxu1  ;;  %3801 = vmatmul.mubr.msk.bf16.vlgmr.msra.gmra.mrb[32].mxu0 %vm5090_vm4, %v3800_v14  ;;  %v1070_v38 = vmax.f32 %v1020_v15, 0.0  ;;  %v942_v57 = vadd.f32 %v4007_v26, %v5083_v33 }
 0x129   : > { %4395 = vmatpush3.bf16.msra.mxu0 %v5077_v24 }
 0x12a   : > { %v4008_v29 = vpop.f32.mrb[20].mxu0  ;;  %v1071_v39 = vmax.f32 %v1023_v22, 0.0 }
 0x12b   : > { %v4009_v34 = vpop.f32.mrb[21].mxu0 }
 0x12c   : > { %v4010_v36 = vadd.f32 %v4009_v34, %v4008_v29  ;;  %v4011_v37 = vpop.f32.mrb[22].mxu0  ;;  %v1092_v48 = vrot.slane %v1071_v39, 7 }
 0x12d   : > { %v1027_v28 = vpop.f32.mrb[12].mxu1  ;;  %v4012_v43 = vpop.f32.mrb[23].mxu0 }
 0x12e   : > { %v1028_v30 = vadd.f32 %v1027_v28, %v931_v27  ;;  %v1029_v31 = vpop.f32.mrb[13].mxu1  ;;  %v4013_v44 = vadd.f32 %v4012_v43, %v4011_v37  ;;  %v947_v2 = vadd.f32 %v4010_v36, %v5083_v33 }
 0x12f   : > { %v1030_v35 = vpop.f32.mrb[14].mxu1 }
 0x130   : > { %v1072_v40 = vmax.f32 %v1028_v30, 0.0  ;;  %v1031_v41 = vadd.f32 %v1030_v35, %v934_v32  ;;  %v1032_v42 = vpop.f32.mrb[15].mxu1  ;;  %v950_v7 = vadd.f32 %v4013_v44, %v5083_v33 }
 0x132   : > { %v1119_v24 = vpack.c.bf16 %v1072_v40, %v1070_v38  ;;  %v1073_v45 = vmax.f32 %v1031_v41, 0.0  ;;  %v4014_v53 = vpop.f32.mrb[24].mxu0 }
 0x133   : > { %v4015_v58 = vpop.f32.mrb[25].mxu0 }
 0x134   : > { %v1093_v49 = vrot.slane %v1073_v45, 7  ;;  %v1120_v50 = vpack.c.bf16 %v1073_v45, %v1071_v39  ;;  %1366 = vmatprep.mubr.bf16.mxu0 %v1119_v24  ;;  %v4016_v60 = vadd.f32 %v4015_v58, %v4014_v53  ;;  %v4017_v61 = vpop.f32.mrb[26].mxu0  ;;  %v4670_v53 = vld [vmem:[%s6188_s4 + $0x50] sm:$0xff]   ;;  %v4676_v58 = vld [vmem:[%s6188_s4 + $0x60] sm:$0xff]  }
 0x135   : > { %v1035_v52 = vpop.f32.mrb[16].mxu1  ;;  %v4018_v0 = vpop.f32.mrb[27].mxu0 }
 0x136   : > { %v3805_v54 = vpack.c.bf16 %v1093_v49, %v1092_v48  ;;  %v1036_v55 = vadd.f32 %v1035_v52, %v939_v46  ;;  %v1037_v56 = vpop.f32.mrb[17].mxu1  ;;  %4387 = vmatmul.mubr.bf16.vlgmr.msra.gmra.mrb[32].mxu1 %v1120_v50  ;;  %v4019_v1 = vadd.f32 %v4018_v0, %v4017_v61  ;;  %v955_v22 = vadd.f32 %v4016_v60, %v5083_v33  ;;  %v4669_v52 = vld [vmem:[%s6187_s3 + $0x8] sm:$0xff]   ;;  %v4678_v60 = vld [vmem:[%s6187_s3 + $0x20] sm:$0xff]   ;;  %v4682_v0 = vld [vmem:[%s6188_s4 + $0x70] sm:$0xff]  }
 0x137   : > { %v1038_v59 = vpop.f32.mrb[18].mxu1  ;;  %4091 = vmatpush3.bf16.msra.mxu1 %v4665_v47  ;;  %4396 = vmatprep.subr.bf16.mxu0 %v4669_v52  ;;  %v4674_v56 = vld [vmem:[%s6188_s4 + $0x18] sm:$0xff]   ;;  %v4679_v61 = vld [vmem:[%s6188_s4 + $0x68] sm:$0xff]  }
 0x138   : > { %v1039_v62 = vadd.f32 %v1038_v59, %v942_v57  ;;  %v1040_v63 = vpop.f32.mrb[19].mxu1  ;;  %3806 = vmatmul.mubr.msk.bf16.gmra.mrb[36].mxu0 %vm5090_vm4, %v3805_v54  ;;  %4092 = vmatprep.subr.bf16.mxu1 %v4667_v51  ;;  %v1074_v13 = vmax.f32 %v1036_v55, 0.0  ;;  %v958_v31 = vadd.f32 %v4019_v1, %v5083_v33  ;;  %v4671_v54 = vld [vmem:[%s6188_s4 + $0x10] sm:$0xff]   ;;  %v4673_v55 = vld [vmem:[%s6188_s4 + $0x58] sm:$0xff]   ;;  %v4677_v59 = vld [vmem:[%s6188_s4 + $0x20] sm:$0xff]  }
 0x139   : > { %4397 = vmatpush3.bf16.msra.mxu0 %v4669_v52  ;;  %v4675_v57 = vld [vmem:[%s6187_s3 + $0x18] sm:$0xff]   ;;  %v4681_v63 = vld [vmem:[%s6187_s3 + $0x28] sm:$0xff]   ;;  %v4683_v1 = vld [vmem:[%s6188_s4 + $0x30] sm:$0xff]  }
 0x13a   : > { %v4020_v4 = vpop.f32.mrb[28].mxu0  ;;  %v1075_v14 = vmax.f32 %v1039_v62, 0.0  ;;  %4398 = vmatprep.subr.bf16.mxu0 %v4672_v12  ;;  %v4680_v62 = vld [vmem:[%s6188_s4 + $0x28] sm:$0xff]  }
 0x13b   : > { %v4021_v8 = vpop.f32.mrb[29].mxu0 }
 0x13c   : > { %v4022_v10 = vadd.f32 %v4021_v8, %v4020_v4  ;;  %v4023_v11 = vpop.f32.mrb[30].mxu0  ;;  %v1094_v23 = vrot.slane %v1075_v14, 7  ;;  %v4686_v4 = vld [vmem:[%s6188_s4 + $0x38] sm:$0xff]  }
 0x13d   : > { %v1043_v3 = vpop.f32.mrb[20].mxu1  ;;  %v4024_v18 = vpop.f32.mrb[31].mxu0  ;;  %4399 = vmatpush3.bf16.msra.mxu0 %v4672_v12 }
 0x13e   : > { %v1044_v5 = vadd.f32 %v1043_v3, %v947_v2  ;;  %v1045_v6 = vpop.f32.mrb[21].mxu1  ;;  %v4025_v19 = vadd.f32 %v4024_v18, %v4023_v11  ;;  %v963_v36 = vadd.f32 %v4022_v10, %v5083_v33  ;;  %4400 = vmatprep.subr.bf16.mxu0 %v4675_v57  ;;  %v4684_v2 = vld [vmem:[%s6187_s3 + $0x30] sm:$0xff]   ;;  %v4685_v3 = vld [vmem:[%s6188_s4 + $0x78] sm:$0xff]  }
 0x13f   : > { %v1046_v9 = vpop.f32.mrb[22].mxu1 }
 0x140   : > { %v1076_v15 = vmax.f32 %v1044_v5, 0.0  ;;  %v1047_v16 = vadd.f32 %v1046_v9, %v950_v7  ;;  %v1048_v17 = vpop.f32.mrb[23].mxu1  ;;  %v966_v40 = vadd.f32 %v4025_v19, %v5083_v33  ;;  %v4668_v33 = vld [vmem:[%s6188_s4 + $0x8] sm:$0xff]   ;;  %v4687_v5 = vld [vmem:[%s6187_s3 + $0x38] sm:$0xff]  }
 0x141   : > { %4093 = vmatpush3.bf16.msra.mxu1 %v4668_v33  ;;  %4401 = vmatpush3.bf16.msra.mxu0 %v4675_v57 }
 0x142   : > { %v1122_v20 = vpack.c.bf16 %v1076_v15, %v1074_v13  ;;  %v1077_v21 = vmax.f32 %v1047_v16, 0.0  ;;  %4094 = vmatprep.subr.bf16.mxu1 %v4670_v53  ;;  %4402 = vmatprep.subr.bf16.mxu0 %v4678_v60  ;;  %v5183_v13 = vld [vmem:[%s6193_s9] ss:$0 sm:$0xff] }
 0x144   : > { %v1095_v25 = vrot.slane %v1077_v21, 7  ;;  %v1123_v26 = vpack.c.bf16 %v1077_v21, %v1075_v14  ;;  %1374 = vmatprep.mubr.bf16.mxu0 %v1122_v20 }
 0x145   : > { %v1051_v27 = vpop.f32.mrb[24].mxu1  ;;  %4095 = vmatpush3.bf16.msra.mxu1 %v4671_v54  ;;  %4403 = vmatpush3.bf16.msra.mxu0 %v4678_v60 }
 0x146   : > { %v3810_v28 = vpack.c.bf16 %v1095_v25, %v1094_v23  ;;  %v1052_v29 = vadd.f32 %v1051_v27, %v955_v22  ;;  %v1053_v30 = vpop.f32.mrb[25].mxu1  ;;  %4390 = vmatprep.mubr.bf16.mxu1 %v1123_v26  ;;  %4096 = vmatprep.subr.bf16.mxu1 %v4673_v55 }
 0x147   : > { %v1054_v32 = vpop.f32.mrb[26].mxu1  ;;  %4404 = vmatprep.subr.bf16.mxu0 %v4681_v63 }
 0x148   : > { %v1055_v34 = vadd.f32 %v1054_v32, %v958_v31  ;;  %v1056_v35 = vpop.f32.mrb[27].mxu1  ;;  %3811 = vmatmul.mubr.msk.bf16.gmra.mrb[40].mxu0 %vm5090_vm4, %v3810_v28  ;;  %v1078_v42 = vmax.f32 %v1052_v29, 0.0 }
 0x149   : > { %4097 = vmatpush3.bf16.msra.mxu1 %v4674_v56  ;;  %4405 = vmatpush3.bf16.msra.mxu0 %v4681_v63 }
 0x14a   : > { %v1079_v43 = vmax.f32 %v1055_v34, 0.0  ;;  %4098 = vmatprep.subr.bf16.mxu1 %v4676_v58  ;;  %4406 = vmatprep.subr.bf16.mxu0 %v4684_v2 }
 0x14c   : > { %v1096_v48 = vrot.slane %v1079_v43, 7 }
 0x14d   : > { %v1059_v37 = vpop.f32.mrb[28].mxu1  ;;  %4099 = vmatpush3.bf16.msra.mxu1 %v4677_v59  ;;  %4407 = vmatpush3.bf16.msra.mxu0 %v4684_v2 }
 0x14e   : > { %v1060_v38 = vadd.f32 %v1059_v37, %v963_v36  ;;  %v1061_v39 = vpop.f32.mrb[29].mxu1  ;;  %4100 = vmatprep.subr.bf16.mxu1 %v4679_v61  ;;  %4408 = vmatprep.subr.bf16.mxu0 %v4687_v5 }
 0x14f   : > { %v1062_v41 = vpop.f32.mrb[30].mxu1 }
 0x150   : > { %v1080_v44 = vmax.f32 %v1060_v38, 0.0  ;;  %v1063_v24 = vadd.f32 %v1062_v41, %v966_v40  ;;  %v1064_v45 = vpop.f32.mrb[31].mxu1 }
 0x151   : > { %4101 = vmatpush3.bf16.msra.mxu1 %v4680_v62  ;;  %4409 = vmatpush3.bf16.msra.mxu0 %v4687_v5 }
 0x152   : > { %v1125_v46 = vpack.c.bf16 %v1080_v44, %v1078_v42  ;;  %v1081_v47 = vmax.f32 %v1063_v24, 0.0  ;;  %4102 = vmatprep.subr.bf16.mxu1 %v4682_v0 }
 0x154   : > { %v1097_v49 = vrot.slane %v1081_v47, 7  ;;  %v1126_v50 = vpack.c.bf16 %v1081_v47, %v1079_v43  ;;  %1382 = vmatprep.mubr.bf16.mxu0 %v1125_v46 }
 0x155   : > { %4103 = vmatpush3.bf16.msra.mxu1 %v4683_v1 }
 0x156   : > { %v3815_v51 = vpack.c.bf16 %v1097_v49, %v1096_v48  ;;  %4391 = vmatmul.mubr.bf16.gmra.mrb[36].mxu1 %v1126_v50  ;;  %4104 = vmatprep.subr.bf16.mxu1 %v4685_v3 }
 0x158   : > { %3816 = vmatmul.mubr.msk.bf16.gmra.mrb[44].mxu0 %vm5090_vm4, %v3815_v51 }
 0x159   : > { %4105 = vmatpush3.bf16.msra.mxu1 %v4686_v4 }
 0x1fb   : > { %v4042_v6 = vpop.f32.mrb[32].mxu0 }
 0x1fc   : > { %v4043_v7 = vpop.f32.mrb[33].mxu0 }
 0x1fd   : > { %v4044_v8 = vadd.f32 %v4043_v7, %v4042_v6  ;;  %v4045_v9 = vpop.f32.mrb[34].mxu0 }
 0x1fe   : > { %v4046_v10 = vpop.f32.mrb[35].mxu0 }
 0x1ff   : > { %v4047_v11 = vadd.f32 %v4046_v10, %v4045_v9  ;;  %v1361_v15 = vadd.f32 %v4044_v8, %v5183_v13 }
 0x201   : > { %v1364_v20 = vadd.f32 %v4047_v11, %v5183_v13 }
 0x209   : > { %v4388_v14 = vpop.f32.mrb[32].mxu1 }
 0x20a   : > { %v1425_v16 = vpop.f32.mrb[33].mxu1 }
 0x20b   : > { %v1426_v17 = vadd.f32 %v1425_v16, %v1361_v15  ;;  %v4048_v18 = vpop.f32.mrb[36].mxu0  ;;  %v4389_v19 = vpop.f32.mrb[34].mxu1 }
 0x20c   : > { %v4049_v21 = vpop.f32.mrb[37].mxu0  ;;  %v1428_v22 = vpop.f32.mrb[35].mxu1 }
 0x20d   : > { %v1456_v23 = vmax.f32 %v1426_v17, 0.0  ;;  %v4050_v25 = vadd.f32 %v4049_v21, %v4048_v18  ;;  %v1429_v26 = vadd.f32 %v1428_v22, %v1364_v20  ;;  %v4051_v27 = vpop.f32.mrb[38].mxu0 }
 0x20e   : > { %v4052_v28 = vpop.f32.mrb[39].mxu0 }
 0x20f   : > { %v1369_v29 = vadd.f32 %v4050_v25, %v5183_v13  ;;  %v1457_v30 = vmax.f32 %v1429_v26, 0.0  ;;  %v4053_v31 = vadd.f32 %v4052_v28, %v4051_v27  ;;  %v1472_v32 = vrot.slane %v1456_v23, 1 }
 0x211   : > { %v1434_v34 = vadd.f32 %v4388_v14, %v1369_v29  ;;  %v1473_v35 = vrot.slane %v1457_v30, 1  ;;  %v1496_v36 = vpack.c.bf16 %v1457_v30, %v1456_v23  ;;  %v1372_v37 = vadd.f32 %v4053_v31, %v5183_v13 }
 0x213   : > { %v1458_v39 = vmax.f32 %v1434_v34, 0.0  ;;  %v3843_v40 = vpack.c.bf16 %v1473_v35, %v1472_v32  ;;  %v1437_v41 = vadd.f32 %v4389_v19, %v1372_v37  ;;  %4410 = vmatprep.mubr.bf16.mxu0 %v1496_v36  ;;  %v5214_v19 = vld [vmem:[%s6194_s10] ss:$0 sm:$0xff] }
 0x215   : > { %v1459_v42 = vmax.f32 %v1437_v41, 0.0  ;;  %3844 = vmatprep.mubr.msk.bf16.mxu1 %vm5191_vm5, %v3843_v40  ;;  %v1474_v43 = vrot.slane %v1458_v39, 1 }
 0x216   : > { %1813 = vmatmul.mubr.bf16.vlgmr.msra.gmra.mrb[40].mxu1 %v1496_v36 }
 0x217   : > { %v1475_v44 = vrot.slane %v1459_v42, 1  ;;  %v1497_v24 = vpack.c.bf16 %v1459_v42, %v1458_v39 }
 0x219   : > { %4411 = vmatmul.mubr.bf16.vlgmr.msra.gmra.mrb[48].mxu0 %v1497_v24  ;;  %v3846_v45 = vpack.c.bf16 %v1475_v44, %v1474_v43 }
 0x21b   : > { %v4054_v46 = vpop.f32.mrb[40].mxu0  ;;  %3847 = vmatprep.mubr.msk.bf16.mxu1 %vm5191_vm5, %v3846_v45 }
 0x21c   : > { %v4055_v47 = vpop.f32.mrb[41].mxu0 }
 0x21d   : > { %v4056_v48 = vadd.f32 %v4055_v47, %v4054_v46  ;;  %v4057_v49 = vpop.f32.mrb[42].mxu0 }
 0x21e   : > { %v4058_v50 = vpop.f32.mrb[43].mxu0  ;;  %1821 = vmatmul.mubr.bf16.gmra.mrb[44].mxu1 %v1497_v24 }
 0x21f   : > { %v4059_v51 = vadd.f32 %v4058_v50, %v4057_v49  ;;  %v1377_v52 = vadd.f32 %v4056_v48, %v5183_v13 }
 0x221   : > { %v1380_v56 = vadd.f32 %v4059_v51, %v5183_v13 }
 0x229   : > { %v4392_v33 = vpop.f32.mrb[36].mxu1 }
 0x22a   : > { %v1441_v53 = vpop.f32.mrb[37].mxu1 }
 0x22b   : > { %v1442_v54 = vadd.f32 %v1441_v53, %v1377_v52  ;;  %v4060_v12 = vpop.f32.mrb[44].mxu0  ;;  %v4393_v55 = vpop.f32.mrb[38].mxu1 }
 0x22c   : > { %v4061_v57 = vpop.f32.mrb[45].mxu0  ;;  %v1444_v58 = vpop.f32.mrb[39].mxu1 }
 0x22d   : > { %v1460_v59 = vmax.f32 %v1442_v54, 0.0  ;;  %v4062_v60 = vadd.f32 %v4061_v57, %v4060_v12  ;;  %v1445_v61 = vadd.f32 %v1444_v58, %v1380_v56  ;;  %v4063_v62 = vpop.f32.mrb[46].mxu0  ;;  %v4712_v54 = vld [vmem:[%s6191_s7 + $0x40] sm:$0xff]   ;;  %v4718_v57 = vld [vmem:[%s6191_s7 + $0x8] sm:$0xff]   ;;  %v4720_v58 = vld [vmem:[%s6191_s7 + $0x50] sm:$0xff]  }
 0x22e   : > { %v4064_v63 = vpop.f32.mrb[47].mxu0  ;;  %v4714_v12 = vld [vmem:[%s6191_s7] sm:$0xff]   ;;  %4162 = vmatprep.subr.bf16.mxu1 %v4712_v54 }
 0x22f   : > { %v1385_v0 = vadd.f32 %v4062_v60, %v5183_v13  ;;  %v1461_v1 = vmax.f32 %v1445_v61, 0.0  ;;  %v4065_v2 = vadd.f32 %v4064_v63, %v4063_v62  ;;  %v1476_v3 = vrot.slane %v1460_v59, 1  ;;  %4163 = vmatpush3.bf16.msra.mxu1 %v4714_v12  ;;  %v4724_v60 = vld [vmem:[%s6191_s7 + $0x58] sm:$0xff]   ;;  %v4728_v62 = vld [vmem:[%s6191_s7 + $0x60] sm:$0xff]   ;;  %v4717_v12 = vld [vmem:[%s6191_s7 + $0xc8] sm:$0xff]  }
 0x230   : > { %v4726_v61 = vld [vmem:[%s6191_s7 + $0x18] sm:$0xff]   ;;  %v4730_v63 = vld [vmem:[%s6191_s7 + $0x20] sm:$0xff]  }
 0x231   : > { %v1450_v4 = vadd.f32 %v4392_v33, %v1385_v0  ;;  %v1477_v5 = vrot.slane %v1461_v1, 1  ;;  %v1498_v6 = vpack.c.bf16 %v1461_v1, %v1460_v59  ;;  %v1388_v7 = vadd.f32 %v4065_v2, %v5183_v13  ;;  %v4688_v13 = vld [vmem:[%s6190_s6] sm:$0xff]   ;;  %v4722_v59 = vld [vmem:[%s6191_s7 + $0x10] sm:$0xff]   ;;  %v4732_v1 = vld [vmem:[%s6191_s7 + $0x68] sm:$0xff]  }
 0x232   : > { %v4715_v54 = vld [vmem:[%s6191_s7 + $0x80] sm:$0xff]  }
 0x233   : > { %v1462_v8 = vmax.f32 %v1450_v4, 0.0  ;;  %v3849_v9 = vpack.c.bf16 %v1477_v5, %v1476_v3  ;;  %v1453_v10 = vadd.f32 %v4393_v55, %v1388_v7  ;;  %4414 = vmatprep.mubr.bf16.mxu0 %v1498_v6  ;;  %v4716_v55 = vld [vmem:[%s6191_s7 + $0x48] sm:$0xff]  }
 0x234   : > { %4164 = vmatprep.subr.bf16.mxu1 %v4716_v55  ;;  %v4734_v7 = vld [vmem:[%s6191_s7 + $0x28] sm:$0xff]  }
 0x235   : > { %v1463_v11 = vmax.f32 %v1453_v10, 0.0  ;;  %3850 = vmatprep.mubr.msk.bf16.mxu1 %vm5191_vm5, %v3849_v9  ;;  %v1478_v14 = vrot.slane %v1462_v8, 1  ;;  %4165 = vmatpush3.bf16.msra.mxu1 %v4718_v57  ;;  %v4719_v55 = vld [vmem:[%s6191_s7 + $0x88] sm:$0xff]   ;;  %v4703_v57 = vld [vmem:[%s6189_s5 + $0x18] sm:$0xff]  }
 0x236   : > { %1829 = vmatmul.mubr.bf16.gmra.mrb[48].mxu1 %v1498_v6  ;;  %4166 = vmatprep.subr.bf16.mxu1 %v4720_v58  ;;  %v4704_v58 = vld [vmem:[%s6189_s5 + $0x20] sm:$0xff]  }
 0x237   : > { %v1479_v15 = vrot.slane %v1463_v11, 1  ;;  %v1499_v16 = vpack.c.bf16 %v1463_v11, %v1462_v8 }
 0x239   : > { %4415 = vmatmul.mubr.bf16.gmra.mrb[52].mxu0 %v1499_v16  ;;  %v3852_v17 = vpack.c.bf16 %v1479_v15, %v1478_v14  ;;  %4167 = vmatpush3.bf16.msra.mxu1 %v4722_v59  ;;  %v4723_v59 = vld [vmem:[%s6191_s7 + $0x90] sm:$0xff]  }
 0x23a   : > { %4426 = vmatprep.mubr.msk.bf16.mxu0 %vm1965_vm6, %v4688_v13  ;;  %4168 = vmatprep.subr.bf16.mxu1 %v4724_v60  ;;  %v4725_v60 = vld [vmem:[%s6191_s7 + $0xd8] sm:$0xff]  }
 0x23b   : > { %3853 = vmatprep.mubr.msk.bf16.mxu1 %vm5191_vm5, %v3852_v17 }
 0x23d   : > { %4169 = vmatpush3.bf16.msra.mxu1 %v4726_v61  ;;  %v4727_v61 = vld [vmem:[%s6191_s7 + $0x98] sm:$0xff]  }
 0x23e   : > { %1837 = vmatmul.mubr.bf16.gmra.mrb[52].mxu1 %v1499_v16  ;;  %4170 = vmatprep.subr.bf16.mxu1 %v4728_v62  ;;  %v4729_v62 = vld [vmem:[%s6191_s7 + $0xe0] sm:$0xff]  }
 0x241   : > { %4171 = vmatpush3.bf16.msra.mxu1 %v4730_v63  ;;  %v4705_v63 = vld [vmem:[%s6189_s5 + $0x28] sm:$0xff]  }
 0x242   : > { %4172 = vmatprep.subr.bf16.mxu1 %v4732_v1  ;;  %v4731_v1 = vld [vmem:[%s6191_s7 + $0xa0] sm:$0xff]  }
 0x245   : > { %4173 = vmatpush3.bf16.msra.mxu1 %v4734_v7  ;;  %v4710_v7 = vld [vmem:[%s6189_s5 + $0x50] sm:$0xff]  }
 0x2e9   : > { %v4106_v18 = vpop.f32.mrb[40].mxu1 }
 0x2ea   : > { %v4107_v20 = vpop.f32.mrb[41].mxu1 }
 0x2eb   : > { %v4108_v21 = vadd.f32 %v4107_v20, %v4106_v18  ;;  %v4109_v22 = vpop.f32.mrb[42].mxu1 }
 0x2ec   : > { %v4412_v23 = vpop.f32.mrb[48].mxu0  ;;  %v4110_v25 = vpop.f32.mrb[43].mxu1 }
 0x2ed   : > { %v1815_v26 = vadd.f32 %v4108_v21, %v5214_v19  ;;  %v1614_v27 = vadd.f32 %v4412_v23, %v5214_v19  ;;  %v4111_v28 = vadd.f32 %v4110_v25, %v4109_v22  ;;  %v1605_v29 = vpop.f32.mrb[49].mxu0 }
 0x2ee   : > { %v1606_v30 = vadd.f32 %v5214_v19, %v1605_v29  ;;  %v4413_v31 = vpop.f32.mrb[50].mxu0 }
 0x2ef   : > { %v1818_v32 = vadd.f32 %v4111_v28, %v5214_v19  ;;  %v1617_v34 = vadd.f32 %v4413_v31, %v5214_v19  ;;  %v1608_v35 = vpop.f32.mrb[51].mxu0  ;;  %v1845_v37 = vmax.f32 %v1815_v26, 0.0  ;;  %v1638_v38 = vmax.f32 %v1614_v27, 0.0 }
 0x2f0   : > { %v1609_v36 = vadd.f32 %v5214_v19, %v1608_v35  ;;  %v1636_v42 = vmax.f32 %v1606_v30, 0.0 }
 0x2f1   : > { %v1846_v39 = vmax.f32 %v1818_v32, 0.0  ;;  %v1639_v40 = vmax.f32 %v1617_v34, 0.0  ;;  %v4112_v41 = vpop.f32.mrb[44].mxu1 }
 0x2f2   : > { %v1637_v43 = vmax.f32 %v1609_v36, 0.0  ;;  %v4113_v44 = vpop.f32.mrb[45].mxu1 }
 0x2f3   : > { %v5222_v24 = vpack.c.bf16 %v1639_v40, %v1638_v38  ;;  %v4114_v45 = vadd.f32 %v4113_v44, %v4112_v41  ;;  %v4115_v46 = vpop.f32.mrb[46].mxu1  ;;  %v1853_v47 = vpack.c.bf16 %v1846_v39, %v1845_v37  ;;  %v4692_v44 = vld [vmem:[%s6190_s6 + $0x20] sm:$0xff]  }
 0x2f4   : > { %v5224_v48 = vpack.c.bf16 %v1637_v43, %v1636_v42  ;;  %v4116_v49 = vpop.f32.mrb[47].mxu1  ;;  %v4689_v42 = vld [vmem:[%s6190_s6 + $0x8] sm:$0xff]   ;;  %v4690_v43 = vld [vmem:[%s6190_s6 + $0x10] sm:$0xff]  }
 0x2f5   : > { %v1823_v50 = vadd.f32 %v4114_v45, %v5214_v19  ;;  %v4117_v51 = vadd.f32 %v4116_v49, %v4115_v46  ;;  %4418 = vmatprep.subr.bf16.mxu0 %v1853_v47  ;;  %v4713_v45 = vld [vmem:[%s6191_s7 + $0xc0] sm:$0xff]   ;;  %v4693_v46 = vld [vmem:[%s6190_s6 + $0x28] sm:$0xff]  }
 0x2f6   : > { %4419 = vmatpush3.bf16.msra.mxu0 %v1853_v47  ;;  %v4695_v47 = vld [vmem:[%s6190_s6 + $0x38] sm:$0xff]   ;;  %v4697_v49 = vld [vmem:[%s6190_s6 + $0x48] sm:$0xff]  }
 0x2f7   : > { %v1826_v33 = vadd.f32 %v4117_v51, %v5214_v19  ;;  %v1847_v52 = vmax.f32 %v1823_v50, 0.0  ;;  %v4698_v50 = vld [vmem:[%s6190_s6 + $0x50] sm:$0xff]   ;;  %v4699_v51 = vld [vmem:[%s6190_s6 + $0x58] sm:$0xff]  }
 0x2f9   : > { %v1848_v53 = vmax.f32 %v1826_v33, 0.0  ;;  %v4700_v33 = vld [vmem:[%s6189_s5] sm:$0xff]  }
 0x2fb   : > { %v1854_v56 = vpack.c.bf16 %v1848_v53, %v1847_v52  ;;  %v4701_v52 = vld [vmem:[%s6189_s5 + $0x8] sm:$0xff]   ;;  %v4702_v53 = vld [vmem:[%s6189_s5 + $0x10] sm:$0xff]  }
 0x2fd   : > { %4420 = vmatprep.subr.bf16.mxu0 %v1854_v56 }
 0x2fe   : > { %4421 = vmatpush3.bf16.msra.mxu0 %v1854_v56  ;;  %v4721_v56 = vld [vmem:[%s6191_s7 + $0xd0] sm:$0xff]  }
 0x309   : > { %v4118_v0 = vpop.f32.mrb[48].mxu1 }
 0x30a   : > { %v4119_v2 = vpop.f32.mrb[49].mxu1 }
 0x30b   : > { %v4120_v3 = vadd.f32 %v4119_v2, %v4118_v0  ;;  %v4121_v4 = vpop.f32.mrb[50].mxu1  ;;  %v4706_v0 = vld [vmem:[%s6189_s5 + $0x30] sm:$0xff]   ;;  %v4733_v2 = vld [vmem:[%s6191_s7 + $0xe8] sm:$0xff]  }
 0x30c   : > { %v4416_v5 = vpop.f32.mrb[52].mxu0  ;;  %v4122_v6 = vpop.f32.mrb[51].mxu1 }
 0x30d   : > { %v1831_v8 = vadd.f32 %v4120_v3, %v5214_v19  ;;  %v1630_v9 = vadd.f32 %v4416_v5, %v5214_v19  ;;  %v4123_v10 = vadd.f32 %v4122_v6, %v4121_v4  ;;  %v1621_v11 = vpop.f32.mrb[53].mxu0  ;;  %v4735_v3 = vld [vmem:[%s6191_s7 + $0xa8] sm:$0xff]   ;;  %v4707_v4 = vld [vmem:[%s6189_s5 + $0x38] sm:$0xff]   ;;  %v4708_v5 = vld [vmem:[%s6189_s5 + $0x40] sm:$0xff]  }
 0x30e   : > { %v1622_v14 = vadd.f32 %v5214_v19, %v1621_v11  ;;  %v4417_v15 = vpop.f32.mrb[54].mxu0  ;;  %v4709_v6 = vld [vmem:[%s6189_s5 + $0x48] sm:$0xff]   ;;  %v4738_v11 = vld [vmem:[%s6191_s7 + $0x30] sm:$0xff]  }
 0x30f   : > { %v1834_v16 = vadd.f32 %v4123_v10, %v5214_v19  ;;  %v1633_v17 = vadd.f32 %v4417_v15, %v5214_v19  ;;  %v1624_v13 = vpop.f32.mrb[55].mxu0  ;;  %v1849_v20 = vmax.f32 %v1831_v8, 0.0  ;;  %v1642_v21 = vmax.f32 %v1630_v9, 0.0  ;;  %v4711_v8 = vld [vmem:[%s6189_s5 + $0x58] sm:$0xff]   ;;  %v4736_v9 = vld [vmem:[%s6191_s7 + $0x70] sm:$0xff]  }
 0x310   : > { %v1625_v18 = vadd.f32 %v5214_v19, %v1624_v13  ;;  %v1640_v26 = vmax.f32 %v1622_v14, 0.0  ;;  %v4737_v10 = vld [vmem:[%s6191_s7 + $0xf0] sm:$0xff]   ;;  %4174 = vmatprep.subr.bf16.mxu1 %v4736_v9  ;;  %v4740_v15 = vld [vmem:[%s6191_s7 + $0x78] sm:$0xff]  }
 0x311   : > { %v1850_v22 = vmax.f32 %v1834_v16, 0.0  ;;  %v1643_v23 = vmax.f32 %v1633_v17, 0.0  ;;  %v4124_v25 = vpop.f32.mrb[52].mxu1  ;;  %v4739_v14 = vld [vmem:[%s6191_s7 + $0xb0] sm:$0xff]   ;;  %4175 = vmatpush3.bf16.msra.mxu1 %v4738_v11  ;;  %v4741_v16 = vld [vmem:[%s6191_s7 + $0xf8] sm:$0xff]  }
 0x312   : > { %v1641_v27 = vmax.f32 %v1625_v18, 0.0  ;;  %v4125_v28 = vpop.f32.mrb[53].mxu1  ;;  %v4742_v17 = vld [vmem:[%s6191_s7 + $0x38] sm:$0xff]   ;;  %4176 = vmatprep.subr.bf16.mxu1 %v4740_v15  ;;  %v4744_v18 = vld [vmem:[%s6191_s7 + $0x140] sm:$0xff]  }
 0x313   : > { %v1647_v29 = vpack.c.bf16 %v1643_v23, %v1642_v21  ;;  %v4126_v30 = vadd.f32 %v4125_v28, %v4124_v25  ;;  %v4127_v31 = vpop.f32.mrb[54].mxu1  ;;  %v1855_v32 = vpack.c.bf16 %v1850_v22, %v1849_v20  ;;  %v4743_v13 = vld [vmem:[%s6191_s7 + $0xb8] sm:$0xff]   ;;  %v5434_v20 = vld [vmem:[%s6191_s7 + $0x180] sm:$0xff]  }
 0x314   : > { %v1646_v34 = vpack.c.bf16 %v1641_v27, %v1640_v26  ;;  %v4128_v35 = vpop.f32.mrb[55].mxu1 }
 0x315   : > { %v1839_v36 = vadd.f32 %v4126_v30, %v5214_v19  ;;  %v4129_v37 = vadd.f32 %v4128_v35, %v4127_v31  ;;  %4422 = vmatprep.subr.bf16.mxu0 %v1855_v32  ;;  %4177 = vmatpush3.bf16.msra.mxu1 %v4742_v17  ;;  %v4748_v17 = vld [vmem:[%s6191_s7 + $0x150] sm:$0xff]  }
 0x316   : > { %4423 = vmatpush3.bf16.msra.mxu0 %v1855_v32  ;;  %4290 = vmatprep.subr.bf16.mxu1 %v4744_v18 }
 0x317   : > { %v1842_v38 = vadd.f32 %v4129_v37, %v5214_v19  ;;  %v1851_v39 = vmax.f32 %v1839_v36, 0.0  ;;  %v4691_v19 = vld [vmem:[%s6190_s6 + $0x18] sm:$0xff]  }
 0x319   : > { %v1852_v40 = vmax.f32 %v1842_v38, 0.0 }
 0x31b   : > { %v1856_v41 = vpack.c.bf16 %v1852_v40, %v1851_v39 }
 0x31d   : > { %4424 = vmatprep.subr.bf16.mxu0 %v1856_v41 }
 0x31e   : > { %4425 = vmatpush3.bf16.msra.mxu0 %v1856_v41 }
 0x31f   : > { %4450 = vmatprep.subr.bf16.mxu0 %v5224_v48 }
 0x321   : > { %4427 = vmatmul.mubr.msk.bf16.vlgmr.msra.gmra.mrb[56].mxu0 %vm1965_vm6, %v4689_v42 }
 0x322   : > { %4451 = vmatpush3.bf16.msra.mxu0 %v5224_v48  ;;  %4430 = vmatprep.mubr.msk.bf16.mxu0 %vm1965_vm6, %v4690_v43  ;;  %v4696_v48 = vld [vmem:[%s6190_s6 + $0x40] sm:$0xff]  }
 0x323   : > { %4452 = vmatprep.subr.bf16.mxu0 %v5222_v24 }
 0x326   : > { %4453 = vmatpush3.bf16.msra.mxu0 %v5222_v24  ;;  %v4694_v24 = vld [vmem:[%s6190_s6 + $0x30] sm:$0xff]  }
 0x327   : > { %4454 = vmatprep.subr.bf16.mxu0 %v1646_v34 }
 0x329   : > { %4431 = vmatmul.mubr.msk.bf16.gmra.mrb[60].mxu0 %vm1965_vm6, %v4691_v19 }
 0x32a   : > { %4455 = vmatpush3.bf16.msra.mxu0 %v1646_v34  ;;  %4434 = vmatprep.mubr.msk.bf16.mxu0 %vm1965_vm6, %v4692_v44 }
 0x32b   : > { %4456 = vmatprep.subr.bf16.mxu0 %v1647_v29 }
 0x32e   : > { %4457 = vmatpush3.bf16.msra.mxu0 %v1647_v29 }
 0x32f   : > { %4226 = vmatprep.subr.bf16.mxu0 %v4713_v45 }
 0x331   : > { %4435 = vmatmul.mubr.msk.bf16.gmra.mrb[64].mxu0 %vm1965_vm6, %v4693_v46 }
 0x332   : > { %4438 = vmatprep.mubr.msk.bf16.mxu0 %vm1965_vm6, %v4694_v24 }
 0x339   : > { %4439 = vmatmul.mubr.msk.bf16.gmra.mrb[68].mxu0 %vm1965_vm6, %v4695_v47 }
 0x33a   : > { %4442 = vmatprep.mubr.msk.bf16.mxu0 %vm1965_vm6, %v4696_v48 }
 0x341   : > { %4443 = vmatmul.mubr.msk.bf16.gmra.mrb[72].mxu0 %vm1965_vm6, %v4697_v49 }
 0x342   : > { %4446 = vmatprep.mubr.msk.bf16.mxu0 %vm1965_vm6, %v4698_v50 }
 0x349   : > { %4447 = vmatmul.mubr.msk.bf16.gmra.mrb[76].mxu0 %vm1965_vm6, %v4699_v51 }
 0x34a   : > { %4458 = vmatprep.mubr.msk.bf16.mxu0 %vm1965_vm6, %v4700_v33 }
 0x351   : > { %4459 = vmatmul.mubr.msk.bf16.vlgmr.msra.gmra.mrb[56].mxu0 %vm1965_vm6, %v4701_v52  ;;  %v4745_v52 = vld [vmem:[%s6191_s7 + $0x100] sm:$0xff]  }
 0x352   : > { %4462 = vmatprep.mubr.msk.bf16.mxu0 %vm1965_vm6, %v4702_v53  ;;  %4227 = vmatpush3.bf16.msra.mxu0 %v4715_v54 }
 0x353   : > { %4228 = vmatprep.subr.bf16.mxu0 %v4717_v12  ;;  %v4746_v12 = vld [vmem:[%s6191_s7 + $0x148] sm:$0xff]  }
 0x356   : > { %4229 = vmatpush3.bf16.msra.mxu0 %v4719_v55  ;;  %v5483_v55 = vld [vmem:[%s6191_s7 + $0x188] sm:$0xff]  }
 0x357   : > { %4230 = vmatprep.subr.bf16.mxu0 %v4721_v56 }
 0x359   : > { %4463 = vmatmul.mubr.msk.bf16.gmra.mrb[60].mxu0 %vm1965_vm6, %v4703_v57 }
 0x35a   : > { %4466 = vmatprep.mubr.msk.bf16.mxu0 %vm1965_vm6, %v4704_v58  ;;  %4231 = vmatpush3.bf16.msra.mxu0 %v4723_v59 }
 0x35b   : > { %4232 = vmatprep.subr.bf16.mxu0 %v4725_v60 }
 0x35e   : > { %4233 = vmatpush3.bf16.msra.mxu0 %v4727_v61 }
 0x35f   : > { %4234 = vmatprep.subr.bf16.mxu0 %v4729_v62 }
 0x361   : > { %4467 = vmatmul.mubr.msk.bf16.gmra.mrb[64].mxu0 %vm1965_vm6, %v4705_v63 }
 0x362   : > { %4470 = vmatprep.mubr.msk.bf16.mxu0 %vm1965_vm6, %v4706_v0  ;;  %4235 = vmatpush3.bf16.msra.mxu0 %v4731_v1 }
 0x363   : > { %4236 = vmatprep.subr.bf16.mxu0 %v4733_v2 }
 0x366   : > { %4237 = vmatpush3.bf16.msra.mxu0 %v4735_v3 }
 0x367   : > { %4238 = vmatprep.subr.bf16.mxu0 %v4737_v10 }
 0x369   : > { %4471 = vmatmul.mubr.msk.bf16.gmra.mrb[68].mxu0 %vm1965_vm6, %v4707_v4 }
 0x36a   : > { %4474 = vmatprep.mubr.msk.bf16.mxu0 %vm1965_vm6, %v4708_v5  ;;  %4239 = vmatpush3.bf16.msra.mxu0 %v4739_v14 }
 0x36b   : > { %4240 = vmatprep.subr.bf16.mxu0 %v4741_v16 }
 0x36e   : > { %4241 = vmatpush3.bf16.msra.mxu0 %v4743_v13  ;;  %v5528_v13 = vld [vmem:[%s6191_s7 + $0x190] sm:$0xff]  }
 0x36f   : > { %4482 = vmatprep.subr.bf16.mxu0 %v5434_v20 }
 0x371   : > { %4475 = vmatmul.mubr.msk.bf16.gmra.mrb[72].mxu0 %vm1965_vm6, %v4709_v6 }
 0x372   : > { %4478 = vmatprep.mubr.msk.bf16.mxu0 %vm1965_vm6, %v4710_v7  ;;  %v4747_v7 = vld [vmem:[%s6191_s7 + $0x108] sm:$0xff]  }
 0x379   : > { %4479 = vmatmul.mubr.msk.bf16.gmra.mrb[76].mxu0 %vm1965_vm6, %v4711_v8 }
 0x424   : > { %v5437_v21 = vpop.f32.mrb[56].mxu0 }
 0x425   : > { %v2440_v22 = vrot.slane %v5437_v21, 2  ;;  %v2554_v23 = vrot.slane %v5437_v21, 4  ;;  %v5441_v25 = vpop.f32.mrb[57].mxu0  ;;  %v2383_v26 = vrot.slane %v5437_v21, 1  ;;  %v2497_v27 = vrot.slane %v5437_v21, 3 }
 0x426   : > { %v2437_v28 = vrot.slane %v5441_v25, 2  ;;  %v2551_v29 = vrot.slane %v5441_v25, 4  ;;  %v5447_v30 = vpop.f32.mrb[58].mxu0  ;;  %v2380_v31 = vrot.slane %v5441_v25, 1  ;;  %v2494_v32 = vrot.slane %v5441_v25, 3 }
 0x427   : > { %v2670_v34 = vrot.slane %v5447_v30, 6  ;;  %v5452_v35 = vpop.f32.mrb[59].mxu0  ;;  %v2385_v36 = vrot.slane %v5447_v30, 1  ;;  %v2499_v37 = vrot.slane %v5447_v30, 3  ;;  %v2442_v38 = vrot.slane %v5447_v30, 2 }
 0x428   : > { %v2438_v39 = vrot.slane %v5452_v35, 2  ;;  %v2552_v40 = vrot.slane %v5452_v35, 4  ;;  %v2381_v41 = vrot.slane %v5452_v35, 1  ;;  %v2495_v42 = vrot.slane %v5452_v35, 3 }
 0x429   : > { %v2721_v43 = vpack.c.bf16 %v5452_v35, %v5441_v25  ;;  %v2608_v19 = vrot.slane %v5441_v25, 5  ;;  %v2609_v44 = vrot.slane %v5452_v35, 5  ;;  %v2611_v45 = vrot.slane %v5437_v21, 5 }
 0x42a   : > { %v2382_v46 = vsel %vm868_vm1, %v2380_v31, %v2381_v41  ;;  %v2384_v24 = vsel %vm868_vm1, %v2381_v41, %v2383_v26  ;;  %v2496_v47 = vsel %vm2493_vm7, %v2494_v32, %v2495_v42  ;;  %v2498_v48 = vsel %vm2493_vm7, %v2495_v42, %v2497_v27 }
 0x42b   : > { %v2722_v49 = vpack.c.bf16 %v2384_v24, %v2382_v46  ;;  %v2724_v50 = vpack.c.bf16 %v2498_v48, %v2496_v47  ;;  %v2439_v51 = vsel %vm2436_vm8, %v2437_v28, %v2438_v39  ;;  %v2441_v33 = vsel %vm2436_vm8, %v2438_v39, %v2440_v22  ;;  %v4750_v46 = vld [vmem:[%s6191_s7 + $0x158] sm:$0xff]  }
 0x42c   : > { %v5475_v53 = vpop.f32.mrb[60].mxu0  ;;  %v2723_v54 = vpack.c.bf16 %v2441_v33, %v2439_v51  ;;  %v5486_v56 = vsel %vm2607_vm9, %v2608_v19, %v2609_v44  ;;  %v5489_v57 = vsel %vm2607_vm9, %v2609_v44, %v2611_v45  ;;  %v2665_v58 = vrot.slane %v5441_v25, 6  ;;  %v5563_v51 = vld [vmem:[%s6191_s7 + $0x198] sm:$0xff]  }
 0x42d   : > { %v5492_v59 = vpop.f32.mrb[61].mxu0  ;;  %3264 = vmatprep.mubr.bf16.mxu1 %v2722_v49  ;;  %3361 = vmatprep.mubr.bf16.mxu0 %v2724_v50  ;;  %v2390_v60 = vrot.slane %v5475_v53, 1  ;;  %v2504_v61 = vrot.slane %v5475_v53, 3  ;;  %v2447_v62 = vrot.slane %v5475_v53, 2  ;;  %v2668_v42 = vrot.slane %v5437_v21, 6 }
 0x42e   : > { %v2671_v0 = vrot.slane %v5492_v59, 6  ;;  %v5500_v1 = vpop.f32.mrb[62].mxu0  ;;  %3265 = vmatmul.mubr.bf16.vlgmr.msra.gmra.mrb[56].mxu1 %v2721_v43  ;;  %3362 = vmatmul.mubr.bf16.vlgmr.msra.gmra.mrb[80].mxu0 %v2723_v54  ;;  %v2386_v2 = vrot.slane %v5492_v59, 1  ;;  %v2500_v3 = vrot.slane %v5492_v59, 3  ;;  %v2728_v4 = vpack.c.bf16 %v5492_v59, %v5447_v30 }
 0x42f   : > { %v5506_v5 = vpop.f32.mrb[63].mxu0  ;;  %4291 = vmatpush3.bf16.msra.mxu1 %v4745_v52  ;;  %v2443_v6 = vrot.slane %v5492_v59, 2  ;;  %v2391_v8 = vrot.slane %v5500_v1, 1  ;;  %v2505_v9 = vrot.slane %v5500_v1, 3  ;;  %v2735_v10 = vpack.c.bf16 %v5500_v1, %v5475_v53  ;;  %4483 = vmatpush3.bf16.msra.mxu0 %v5434_v20 }
 0x430   : > { %v2673_v11 = vrot.slane %v5506_v5, 6  ;;  %v2387_v14 = vsel %vm868_vm1, %v2385_v36, %v2386_v2  ;;  %v2388_v15 = vrot.slane %v5506_v5, 1  ;;  %v2501_v16 = vsel %vm2493_vm7, %v2499_v37, %v2500_v3  ;;  %4292 = vmatprep.subr.bf16.mxu1 %v4746_v12  ;;  %4484 = vmatprep.subr.bf16.mxu0 %v5483_v55 }
 0x431   : > { %v2502_v18 = vrot.slane %v5506_v5, 3  ;;  %v2444_v22 = vsel %vm2436_vm8, %v2442_v38, %v2443_v6  ;;  %v2445_v26 = vrot.slane %v5506_v5, 2  ;;  %v2392_v27 = vsel %vm868_vm1, %v2390_v60, %v2391_v8  ;;  %v4749_v38 = vld [vmem:[%s6191_s7 + $0x110] sm:$0xff]  }
 0x432   : > { %v2389_v28 = vsel %vm868_vm1, %v2386_v2, %v2388_v15  ;;  %v2506_v31 = vsel %vm2493_vm7, %v2504_v61, %v2505_v9  ;;  %v2448_v32 = vrot.slane %v5500_v1, 2  ;;  %v2666_v36 = vrot.slane %v5452_v35, 6  ;;  %v4756_v35 = vld [vmem:[%s6191_s7 + $0x168] sm:$0xff]  }
 0x433   : > { %v2729_v37 = vpack.c.bf16 %v2389_v28, %v2387_v14  ;;  %v2503_v39 = vsel %vm2493_vm7, %v2500_v3, %v2502_v18  ;;  %v2446_v41 = vsel %vm2436_vm8, %v2443_v6, %v2445_v26  ;;  %4293 = vmatpush3.bf16.msra.mxu1 %v4747_v7  ;;  %4485 = vmatpush3.bf16.msra.mxu0 %v5483_v55  ;;  %v2613_v24 = vrot.slane %v5447_v30, 5 }
 0x434   : > { %v5545_v43 = vpop.f32.mrb[64].mxu0  ;;  %v2731_v19 = vpack.c.bf16 %v2503_v39, %v2501_v16  ;;  %v2730_v44 = vpack.c.bf16 %v2446_v41, %v2444_v22  ;;  %v5548_v45 = vsel %vm2436_vm8, %v2447_v62, %v2448_v32  ;;  %4294 = vmatprep.subr.bf16.mxu1 %v4748_v17  ;;  %4486 = vmatprep.subr.bf16.mxu0 %v5528_v13  ;;  %v4751_v16 = vld [vmem:[%s6191_s7 + $0x118] sm:$0xff]  }
 0x435   : > { %v5555_v47 = vpop.f32.mrb[65].mxu0  ;;  %3272 = vmatprep.mubr.bf16.mxu1 %v2729_v37  ;;  %v2396_v48 = vrot.slane %v5545_v43, 1  ;;  %v2510_v49 = vrot.slane %v5545_v43, 3  ;;  %v2453_v50 = vrot.slane %v5545_v43, 2  ;;  %v5566_v33 = vsel %vm2664_vm10, %v2665_v58, %v2666_v36 }
 0x436   : > { %3369 = vmatprep.mubr.bf16.mxu0 %v2731_v19  ;;  %v5568_v52 = vpop.f32.mrb[66].mxu0  ;;  %3273 = vmatmul.mubr.bf16.gmra.mrb[60].mxu1 %v2728_v4  ;;  %v2393_v54 = vrot.slane %v5555_v47, 1  ;;  %v2507_v12 = vrot.slane %v5555_v47, 3  ;;  %v2450_v60 = vrot.slane %v5555_v47, 2  ;;  %v5574_v61 = vsel %vm2664_vm10, %v2666_v36, %v2668_v42  ;;  %v4754_v19 = vld [vmem:[%s6191_s7 + $0x120] sm:$0xff]  }
 0x437   : > { %3370 = vmatmul.mubr.bf16.gmra.mrb[84].mxu0 %v2730_v44  ;;  %v5576_v62 = vpop.f32.mrb[67].mxu0  ;;  %v2398_v2 = vrot.slane %v5568_v52, 1  ;;  %v2512_v58 = vrot.slane %v5568_v52, 3  ;;  %4295 = vmatpush3.bf16.msra.mxu1 %v4749_v38  ;;  %v2455_v3 = vrot.slane %v5568_v52, 2  ;;  %v5616_v41 = vsel %vm2550_vm11, %v2551_v29, %v2552_v40 }
 0x438   : > { %v2394_v6 = vsel %vm868_vm1, %v2391_v8, %v2393_v54  ;;  %v2508_v7 = vsel %vm2493_vm7, %v2505_v9, %v2507_v12  ;;  %v2451_v14 = vsel %vm2436_vm8, %v2448_v32, %v2450_v60  ;;  %v2395_v15 = vrot.slane %v5576_v62, 1  ;;  %4296 = vmatprep.subr.bf16.mxu1 %v4750_v46  ;;  %4487 = vmatpush3.bf16.msra.mxu0 %v5528_v13  ;;  %v4752_v8 = vld [vmem:[%s6191_s7 + $0x160] sm:$0xff]   ;;  %v5664_v12 = vld [vmem:[%s6191_s7 + $0x1a8] sm:$0xff]  }
 0x439   : > { %v2736_v17 = vpack.c.bf16 %v2394_v6, %v2392_v27  ;;  %v2738_v18 = vpack.c.bf16 %v2508_v7, %v2506_v31  ;;  %v2737_v22 = vpack.c.bf16 %v2451_v14, %v5548_v45  ;;  %v2399_v26 = vsel %vm868_vm1, %v2396_v48, %v2398_v2  ;;  %4488 = vmatprep.subr.bf16.mxu0 %v5563_v51  ;;  %v5600_v9 = vld [vmem:[%s6191_s7 + $0x1a0] sm:$0xff]  }
 0x43a   : > { %6209 = vst [vmem:[#allocation2_spill] sm:$0xff] %v5600_v9  ;;  %v2397_v28 = vsel %vm868_vm1, %v2395_v15, %v2396_v48  ;;  %v2509_v27 = vrot.slane %v5576_v62, 3  ;;  %v2513_v31 = vsel %vm2493_vm7, %v2510_v49, %v2512_v58  ;;  %v2742_v32 = vpack.c.bf16 %v5545_v43, %v5576_v62  ;;  %6210 = vst [vmem:[#allocation3_spill] sm:$0xff] %v5664_v12 }
 0x43b   : > { %3280 = vmatprep.mubr.bf16.mxu1 %v2736_v17  ;;  %3377 = vmatprep.mubr.bf16.mxu0 %v2738_v18  ;;  %v2743_v36 = vpack.c.bf16 %v2399_v26, %v2397_v28  ;;  %v2452_v37 = vrot.slane %v5576_v62, 2  ;;  %v5609_v39 = vsel %vm2436_vm8, %v2453_v50, %v2455_v3  ;;  %v5630_v25 = vsel %vm2550_vm11, %v2552_v40, %v2554_v23  ;;  %v4760_v17 = vld [vmem:[%s6191_s7 + $0x170] sm:$0xff]  }
 0x43c   : > { %v5618_v38 = vpop.f32.mrb[68].mxu0  ;;  %v2511_v42 = vsel %vm2493_vm7, %v2509_v27, %v2510_v49  ;;  %4297 = vmatpush3.bf16.msra.mxu1 %v4751_v16  ;;  %4489 = vmatpush3.bf16.msra.mxu0 %v5563_v51  ;;  %v5637_v29 = vsel %vm2664_vm10, %v2670_v34, %v2671_v0  ;;  %v2614_v44 = vrot.slane %v5492_v59, 5  ;;  %v4758_v16 = vld [vmem:[%s6191_s7 + $0x128] sm:$0xff]  }
 0x43d   : > { %v5640_v45 = vpop.f32.mrb[69].mxu0  ;;  %v2745_v46 = vpack.c.bf16 %v2513_v31, %v2511_v42  ;;  %v5643_v48 = vsel %vm2436_vm8, %v2452_v37, %v2453_v50  ;;  %v2403_v21 = vrot.slane %v5618_v38, 1  ;;  %v2517_v23 = vrot.slane %v5618_v38, 3  ;;  %4298 = vmatprep.subr.bf16.mxu1 %v4752_v8  ;;  %4490 = vmatprep.subr.bf16.mxu0 %v5600_v9 }
 0x43e   : > { %v5651_v34 = vpop.f32.mrb[70].mxu0  ;;  %3281 = vmatmul.mubr.bf16.gmra.mrb[64].mxu1 %v2735_v10  ;;  %v2744_v40 = vpack.c.bf16 %v5609_v39, %v5643_v48  ;;  %v2400_v49 = vrot.slane %v5640_v45, 1  ;;  %v2514_v50 = vrot.slane %v5640_v45, 3  ;;  %v2457_v54 = vrot.slane %v5640_v45, 2 }
 0x43f   : > { %3378 = vmatmul.mubr.bf16.gmra.mrb[88].mxu0 %v2737_v22  ;;  %v5666_v60 = vpop.f32.mrb[71].mxu0  ;;  %3288 = vmatprep.mubr.bf16.mxu1 %v2743_v36  ;;  %v2460_v10 = vrot.slane %v5618_v38, 2  ;;  %v2405_v2 = vrot.slane %v5651_v34, 1  ;;  %v2519_v58 = vrot.slane %v5651_v34, 3  ;;  %v2462_v3 = vrot.slane %v5651_v34, 2 }
 0x440   : > { %3385 = vmatprep.mubr.bf16.mxu0 %v2745_v46  ;;  %v2401_v6 = vrot.slane %v5666_v60, 1  ;;  %v2515_v7 = vrot.slane %v5666_v60, 3  ;;  %v2458_v15 = vrot.slane %v5666_v60, 2  ;;  %4299 = vmatpush3.bf16.msra.mxu1 %v4754_v19  ;;  %v5691_v22 = vsel %vm2664_vm10, %v2671_v0, %v2673_v11  ;;  %v5707_v0 = vld [vmem:[%s6191_s7 + $0x1b0] sm:$0xff]  }
 0x441   : > { %4300 = vmatprep.subr.bf16.mxu1 %v4756_v35  ;;  %4491 = vmatpush3.bf16.msra.mxu0 %v5600_v9  ;;  %v5696_v26 = vsel %vm2607_vm9, %v2613_v24, %v2614_v44  ;;  %v2616_v8 = vrot.slane %v5506_v5, 5  ;;  %6211 = vst [vmem:[#allocation4_spill] sm:$0xff] %v5707_v0  ;;  %v4762_v46 = vld [vmem:[%s6191_s7 + $0x130] sm:$0xff]  }
 0x442   : > { %v2402_v28 = vsel %vm868_vm1, %v2400_v49, %v2401_v6  ;;  %v2404_v27 = vsel %vm868_vm1, %v2401_v6, %v2403_v21  ;;  %v2516_v31 = vsel %vm2493_vm7, %v2514_v50, %v2515_v7  ;;  %v2518_v36 = vsel %vm2493_vm7, %v2515_v7, %v2517_v23  ;;  %4492 = vmatprep.subr.bf16.mxu0 %v5664_v12 }
 0x443   : > { %v2750_v11 = vpack.c.bf16 %v2404_v27, %v2402_v28  ;;  %v2752_v24 = vpack.c.bf16 %v2518_v36, %v2516_v31  ;;  %v5710_v37 = vsel %vm2436_vm8, %v2457_v54, %v2458_v15  ;;  %v5713_v39 = vsel %vm2436_vm8, %v2458_v15, %v2460_v10  ;;  %v4764_v10 = vld [vmem:[%s6191_s7 + $0x178] sm:$0xff]  }
 0x444   : > { %v5715_v42 = vpop.f32.mrb[72].mxu0  ;;  %4301 = vmatpush3.bf16.msra.mxu1 %v4758_v16  ;;  %v5725_v21 = vsel %vm2607_vm9, %v2614_v44, %v2616_v8  ;;  %v2675_v23 = vrot.slane %v5475_v53, 6  ;;  %v5753_v8 = vld [vmem:[%s6191_s7 + $0x1b8] sm:$0xff]  }
 0x445   : > { %v5728_v35 = vpop.f32.mrb[73].mxu0  ;;  %v2410_v49 = vrot.slane %v5715_v42, 1  ;;  %v2524_v50 = vrot.slane %v5715_v42, 3  ;;  %v2467_v54 = vrot.slane %v5715_v42, 2  ;;  %4302 = vmatprep.subr.bf16.mxu1 %v4760_v17  ;;  %4493 = vmatpush3.bf16.msra.mxu0 %v5664_v12  ;;  %6212 = vst [vmem:[#allocation5_spill] sm:$0xff] %v5753_v8 }
 0x446   : > { %v5739_v6 = vpop.f32.mrb[74].mxu0  ;;  %3289 = vmatmul.mubr.bf16.gmra.mrb[68].mxu1 %v2742_v32  ;;  %v2406_v7 = vrot.slane %v5728_v35, 1  ;;  %v2520_v15 = vrot.slane %v5728_v35, 3  ;;  %v2463_v17 = vrot.slane %v5728_v35, 2  ;;  %4494 = vmatprep.subr.bf16.mxu0 %v5707_v0 }
 0x447   : > { %3386 = vmatmul.mubr.bf16.gmra.mrb[92].mxu0 %v2744_v40  ;;  %v5755_v28 = vpop.f32.mrb[75].mxu0  ;;  %3296 = vmatprep.mubr.bf16.mxu1 %v2750_v11  ;;  %v2411_v32 = vrot.slane %v5739_v6, 1  ;;  %v2525_v27 = vrot.slane %v5739_v6, 3  ;;  %v2468_v36 = vrot.slane %v5739_v6, 2  ;;  %v4766_v11 = vld [vmem:[%s6191_s7 + $0x138] sm:$0xff]  }
 0x448   : > { %3393 = vmatprep.mubr.bf16.mxu0 %v2752_v24  ;;  %v2407_v44 = vsel %vm868_vm1, %v2405_v2, %v2406_v7  ;;  %v2408_v48 = vrot.slane %v5755_v28, 1  ;;  %v2521_v18 = vsel %vm2493_vm7, %v2519_v58, %v2520_v15  ;;  %v2522_v40 = vrot.slane %v5755_v28, 3  ;;  %4303 = vmatpush3.bf16.msra.mxu1 %v4762_v46 }
 0x449   : > { %v5772_v4 = vsel %vm2436_vm8, %v2462_v3, %v2463_v17  ;;  %v2465_v24 = vrot.slane %v5755_v28, 2  ;;  %v5776_v2 = vsel %vm868_vm1, %v2410_v49, %v2411_v32  ;;  %v5779_v63 = vsel %vm2493_vm7, %v2524_v50, %v2525_v27  ;;  %4304 = vmatprep.subr.bf16.mxu1 %v4764_v10  ;;  %4495 = vmatpush3.bf16.msra.mxu0 %v5707_v0 }
 0x44a   : > { %v2409_v58 = vsel %vm868_vm1, %v2406_v7, %v2408_v48  ;;  %v2523_v46 = vsel %vm2493_vm7, %v2520_v15, %v2522_v40  ;;  %v5785_v31 = vsel %vm2436_vm8, %v2467_v54, %v2468_v36  ;;  %4496 = vmatprep.subr.bf16.mxu0 %v5753_v8  ;;  %v2676_v3 = vrot.slane %v5500_v1, 6 }
 0x44b   : > { %v2757_v16 = vpack.c.bf16 %v2409_v58, %v2407_v44  ;;  %v2759_v49 = vpack.c.bf16 %v2523_v46, %v2521_v18  ;;  %v2466_v19 = vsel %vm2436_vm8, %v2463_v17, %v2465_v24  ;;  %v2678_v50 = vrot.slane %v5555_v47, 6 }
 0x44c   : > { %v5791_v10 = vpop.f32.mrb[76].mxu0  ;;  %v2758_v14 = vpack.c.bf16 %v2466_v19, %v5772_v4  ;;  %4305 = vmatpush3.bf16.msra.mxu1 %v4766_v11  ;;  %v5795_v48 = vsel %vm2664_vm10, %v2675_v23, %v2676_v3  ;;  %v2556_v54 = vrot.slane %v5447_v30, 4  ;;  %v2557_v7 = vrot.slane %v5492_v59, 4 }
 0x44d   : > { %v5800_v44 = vpop.f32.mrb[77].mxu0  ;;  %v2416_v18 = vrot.slane %v5791_v10, 1  ;;  %v2530_v17 = vrot.slane %v5791_v10, 3  ;;  %v2473_v40 = vrot.slane %v5791_v10, 2  ;;  %4497 = vmatpush3.bf16.msra.mxu0 %v5753_v8  ;;  %4514 = vmatprep.subr.bf16.mxu1 %v5434_v20  ;;  %v6213_v30 = vpack.c.bf16 %v5666_v60, %v5640_v45 }
 0x44e   : > { %v5807_v4 = vpop.f32.mrb[78].mxu0  ;;  %v2413_v59 = vrot.slane %v5800_v44, 1  ;;  %v2527_v19 = vrot.slane %v5800_v44, 3  ;;  %v2470_v23 = vrot.slane %v5800_v44, 2  ;;  %v5816_v11 = vsel %vm2664_vm10, %v2676_v3, %v2678_v50 }
 0x44f   : > { %3297 = vmatmul.mubr.bf16.gmra.mrb[72].mxu1 %v6213_v30  ;;  %v6214_v58 = vpack.c.bf16 %v5713_v39, %v5710_v37  ;;  %v5822_v46 = vpop.f32.mrb[79].mxu0  ;;  %v2418_v30 = vrot.slane %v5807_v4, 1  ;;  %v2532_v15 = vrot.slane %v5807_v4, 3  ;;  %v2475_v8 = vrot.slane %v5807_v4, 2 }
 0x450   : > { %3304 = vmatprep.mubr.bf16.mxu1 %v2757_v16  ;;  %v2700_v0 = vrot.slane %v5822_v46, 6  ;;  %v2414_v3 = vsel %vm868_vm1, %v2411_v32, %v2413_v59  ;;  %v2528_v50 = vsel %vm2493_vm7, %v2525_v27, %v2527_v19  ;;  %v2471_v24 = vsel %vm2436_vm8, %v2468_v36, %v2470_v23 }
 0x451   : > { %3394 = vmatmul.mubr.bf16.gmra.mrb[96].mxu0 %v6214_v58  ;;  %v2764_v37 = vpack.c.bf16 %v2414_v3, %v5776_v2  ;;  %v2766_v39 = vpack.c.bf16 %v2528_v50, %v5779_v63  ;;  %v2765_v16 = vpack.c.bf16 %v2471_v24, %v5785_v31  ;;  %v2415_v58 = vrot.slane %v5822_v46, 1 }
 0x452   : > { %3401 = vmatprep.mubr.bf16.mxu0 %v2759_v49  ;;  %v2419_v12 = vsel %vm868_vm1, %v2416_v18, %v2418_v30  ;;  %v2529_v9 = vrot.slane %v5822_v46, 3  ;;  %v2533_v49 = vsel %vm2493_vm7, %v2530_v17, %v2532_v15  ;;  %v2770_v32 = vpack.c.bf16 %v5791_v10, %v5822_v46 }
 0x453   : > { %v2417_v27 = vsel %vm868_vm1, %v2415_v58, %v2416_v18  ;;  %v2472_v36 = vrot.slane %v5822_v46, 2  ;;  %v5843_v2 = vsel %vm2436_vm8, %v2473_v40, %v2475_v8  ;;  %v2741_v63 = vpack.c.bf16 %v5816_v11, %v5795_v48  ;;  %v6235_v48 = vld [vmem:[#allocation5_spill] sm:$0xff] }
 0x454   : > { %v2771_v31 = vpack.c.bf16 %v2419_v12, %v2417_v27  ;;  %v2531_v59 = vsel %vm2493_vm7, %v2529_v9, %v2530_v17  ;;  %v5849_v19 = vsel %vm2550_vm11, %v2556_v54, %v2557_v7  ;;  %v2559_v15 = vrot.slane %v5506_v5, 4 }
 0x455   : > { %v2773_v23 = vpack.c.bf16 %v2533_v49, %v2531_v59  ;;  %v5853_v24 = vsel %vm2436_vm8, %v2472_v36, %v2473_v40  ;;  %v2680_v18 = vrot.slane %v5576_v62, 6  ;;  %v2681_v8 = vrot.slane %v5545_v43, 6 }
 0x456   : > { %v6215_v30 = vpack.c.bf16 %v5728_v35, %v5651_v34  ;;  %v2772_v9 = vpack.c.bf16 %v5843_v2, %v5853_v24  ;;  %v5863_v12 = vsel %vm2550_vm11, %v2557_v7, %v2559_v15  ;;  %v2683_v5 = vrot.slane %v5568_v52, 6 }
 0x457   : > { %v2618_v54 = vrot.slane %v5475_v53, 5  ;;  %v2732_v17 = vpack.c.bf16 %v5863_v12, %v5849_v19  ;;  %v5870_v40 = vsel %vm2664_vm10, %v2680_v18, %v2681_v8  ;;  %v2619_v3 = vrot.slane %v5500_v1, 5  ;;  %v6093_v19 = vld [vmem:[%s6195_s11] ss:$0 sm:$0xff] }
 0x458   : > { %3305 = vmatmul.mubr.bf16.gmra.mrb[76].mxu1 %v6215_v30  ;;  %v2621_v50 = vrot.slane %v5555_v47, 5  ;;  %v5875_v7 = vsel %vm2664_vm10, %v2681_v8, %v2683_v5  ;;  %v2685_v58 = vrot.slane %v5640_v45, 6  ;;  %v2686_v49 = vrot.slane %v5666_v60, 6 }
 0x459   : > { %3402 = vmatmul.mubr.bf16.gmra.mrb[100].mxu0 %v2758_v14  ;;  %3312 = vmatprep.mubr.bf16.mxu1 %v2764_v37  ;;  %v2688_v14 = vrot.slane %v5618_v38, 6  ;;  %v5883_v27 = vsel %vm2607_vm9, %v2618_v54, %v2619_v3  ;;  %v2562_v8 = vrot.slane %v5500_v1, 4  ;;  %v2564_v5 = vrot.slane %v5555_v47, 4 }
 0x45a   : > { %3409 = vmatprep.mubr.bf16.mxu0 %v2766_v39  ;;  %v5886_v36 = vsel %vm2607_vm9, %v2619_v3, %v2621_v50  ;;  %v2561_v39 = vrot.slane %v5475_v53, 4  ;;  %v5892_v15 = vsel %vm2664_vm10, %v2685_v58, %v2686_v49  ;;  %v2690_v54 = vrot.slane %v5651_v34, 6 }
 0x45b   : > { %v5895_v18 = vsel %vm2664_vm10, %v2686_v49, %v2688_v14  ;;  %v2691_v53 = vrot.slane %v5728_v35, 6  ;;  %v2693_v50 = vrot.slane %v5755_v28, 6  ;;  %v2623_v58 = vrot.slane %v5576_v62, 5 }
 0x45c   : > { %v5904_v3 = vsel %vm2550_vm11, %v2561_v39, %v2562_v8  ;;  %v2624_v49 = vrot.slane %v5545_v43, 5  ;;  %v5910_v1 = vsel %vm2550_vm11, %v2562_v8, %v2564_v5  ;;  %v2626_v47 = vrot.slane %v5568_v52, 5 }
 0x45d   : > { %v5913_v14 = vsel %vm2664_vm10, %v2690_v54, %v2691_v53  ;;  %v2566_v30 = vrot.slane %v5576_v62, 4  ;;  %v6216_v39 = vpack.c.bf16 %v5739_v6, %v5715_v42  ;;  %v5923_v37 = vsel %vm2664_vm10, %v2691_v53, %v2693_v50 }
 0x45e   : > { %v5926_v8 = vsel %vm2607_vm9, %v2623_v58, %v2624_v49  ;;  %v2567_v5 = vrot.slane %v5545_v43, 4  ;;  %v2762_v62 = vpack.c.bf16 %v5923_v37, %v5913_v14  ;;  %v5932_v54 = vsel %vm2607_vm9, %v2624_v49, %v2626_v47 }
 0x45f   : > { %v2628_v59 = vrot.slane %v5640_v45, 5  ;;  %v2629_v43 = vrot.slane %v5666_v60, 5  ;;  %v2571_v58 = vrot.slane %v5640_v45, 4  ;;  %v2574_v49 = vrot.slane %v5618_v38, 4 }
 0x460   : > { %3313 = vmatmul.mubr.bf16.gmra.mrb[80].mxu1 %v6216_v39  ;;  %v2569_v39 = vrot.slane %v5568_v52, 4  ;;  %v5939_v50 = vsel %vm2550_vm11, %v2566_v30, %v2567_v5  ;;  %v2572_v52 = vrot.slane %v5666_v60, 4  ;;  %v2633_v53 = vrot.slane %v5651_v34, 5 }
 0x461   : > { %3410 = vmatmul.mubr.bf16.gmra.mrb[104].mxu0 %v2765_v16  ;;  %3320 = vmatprep.mubr.bf16.mxu1 %v2771_v31  ;;  %v2631_v16 = vrot.slane %v5618_v38, 5  ;;  %v5952_v47 = vsel %vm2607_vm9, %v2628_v59, %v2629_v43  ;;  %v2634_v38 = vrot.slane %v5728_v35, 5  ;;  %v6218_v59 = vpack.c.bf16 %v5574_v61, %v5566_v33 }
 0x462   : > { %3417 = vmatprep.mubr.bf16.mxu0 %v2773_v23  ;;  %v5944_v31 = vsel %vm2550_vm11, %v2567_v5, %v2569_v39  ;;  %v5961_v45 = vsel %vm2550_vm11, %v2571_v58, %v2572_v52  ;;  %v5964_v60 = vsel %vm2550_vm11, %v2572_v52, %v2574_v49  ;;  %v2636_v39 = vrot.slane %v5755_v28, 5 }
 0x463   : > { %v5955_v30 = vsel %vm2607_vm9, %v2629_v43, %v2631_v16  ;;  %v2576_v43 = vrot.slane %v5651_v34, 4  ;;  %v2577_v16 = vrot.slane %v5728_v35, 4  ;;  %v5973_v23 = vsel %vm2607_vm9, %v2633_v53, %v2634_v38 }
 0x464   : > { %v2579_v58 = vrot.slane %v5755_v28, 4  ;;  %v2638_v5 = vrot.slane %v5715_v42, 5  ;;  %v2639_v52 = vrot.slane %v5739_v6, 5  ;;  %v5982_v49 = vsel %vm2607_vm9, %v2634_v38, %v2636_v39 }
 0x465   : > { %v5985_v34 = vsel %vm2550_vm11, %v2576_v43, %v2577_v16  ;;  %v2641_v35 = vrot.slane %v5800_v44, 5  ;;  %v2581_v53 = vrot.slane %v5715_v42, 4  ;;  %v6217_v28 = vpack.c.bf16 %v5489_v57, %v5486_v56 }
 0x466   : > { %v2580_v38 = vsel %vm2550_vm11, %v2577_v16, %v2579_v58  ;;  %v2640_v39 = vsel %vm2607_vm9, %v2638_v5, %v2639_v52  ;;  %v2582_v43 = vrot.slane %v5739_v6, 4  ;;  %v2584_v56 = vrot.slane %v5800_v44, 4 }
 0x467   : > { %v2760_v2 = vpack.c.bf16 %v2580_v38, %v5985_v34  ;;  %v2642_v24 = vsel %vm2607_vm9, %v2639_v52, %v2641_v35  ;;  %v2643_v57 = vrot.slane %v5822_v46, 5  ;;  %v2644_v16 = vrot.slane %v5791_v10, 5 }
 0x468   : > { %3321 = vmatmul.mubr.bf16.gmra.mrb[84].mxu1 %v2770_v32  ;;  %v2761_v32 = vpack.c.bf16 %v5982_v49, %v5973_v23  ;;  %v2583_v23 = vsel %vm2550_vm11, %v2581_v53, %v2582_v43  ;;  %v2646_v5 = vrot.slane %v5807_v4, 5  ;;  %v2585_v58 = vsel %vm2550_vm11, %v2582_v43, %v2584_v56 }
 0x469   : > { %3418 = vmatmul.mubr.bf16.gmra.mrb[108].mxu0 %v2772_v9  ;;  %3458 = vmatprep.mubr.bf16.mxu1 %v6217_v28  ;;  %v2768_v9 = vpack.c.bf16 %v2642_v24, %v2640_v39  ;;  %v2586_v33 = vrot.slane %v5822_v46, 4  ;;  %v2587_v61 = vrot.slane %v5791_v10, 4  ;;  %v2767_v52 = vpack.c.bf16 %v2585_v58, %v2583_v23 }
 0x46a   : > { %4498 = vmatprep.mubr.bf16.mxu0 %v6218_v59  ;;  %v2589_v59 = vrot.slane %v5807_v4, 4  ;;  %v2645_v49 = vsel %vm2607_vm9, %v2643_v57, %v2644_v16  ;;  %v2647_v34 = vsel %vm2607_vm9, %v2644_v16, %v2646_v5  ;;  %v2695_v35 = vrot.slane %v5715_v42, 6 }
 0x46b   : > { %v2775_v53 = vpack.c.bf16 %v2647_v34, %v2645_v49  ;;  %v2588_v28 = vsel %vm2550_vm11, %v2586_v33, %v2587_v61  ;;  %v2696_v39 = vrot.slane %v5739_v6, 6  ;;  %v2698_v24 = vrot.slane %v5800_v44, 6 }
 0x46c   : > { %v2590_v38 = vsel %vm2550_vm11, %v2587_v61, %v2589_v59  ;;  %v6219_v56 = vrot.slane %v5791_v10, 6  ;;  %v6220_v23 = vrot.slane %v5807_v4, 6  ;;  %v6222_v5 = vpack.c.bf16 %v5630_v25, %v5616_v41 }
 0x46d   : > { %v2774_v43 = vpack.c.bf16 %v2590_v38, %v2588_v28  ;;  %v2697_v6 = vsel %vm2664_vm10, %v2695_v35, %v2696_v39  ;;  %v6223_v44 = vpack.c.bf16 %v5691_v22, %v5637_v29  ;;  %v2699_v4 = vsel %vm2664_vm10, %v2696_v39, %v2698_v24 }
 0x46e   : > { %v2702_v57 = vsel %vm2664_vm10, %v2700_v0, %v6219_v56  ;;  %v6221_v42 = vmov %v6219_v56  ;;  %v6224_v0 = vpack.c.bf16 %v5725_v21, %v5696_v26  ;;  %v2769_v41 = vpack.c.bf16 %v2699_v4, %v2697_v6 }
 0x46f   : > { %v2704_v16 = vsel %vm2664_vm10, %v6221_v42, %v6220_v23  ;;  %v6225_v25 = vpack.c.bf16 %v5875_v7, %v5870_v40  ;;  %v6227_v29 = vpack.c.bf16 %v5895_v18, %v5892_v15  ;;  %v6229_v22 = vpack.c.bf16 %v5910_v1, %v5904_v3 }
 0x470   : > { %3459 = vmatmul.mubr.bf16.vlgmr.msra.gmra.mrb[88].mxu1 %v6222_v5  ;;  %v2776_v58 = vpack.c.bf16 %v2704_v16, %v2702_v57  ;;  %v6230_v26 = vpack.c.bf16 %v5932_v54, %v5926_v8  ;;  %v6233_v21 = vpack.c.bf16 %v5944_v31, %v5939_v50  ;;  %v6234_v10 = vpack.c.bf16 %v5955_v30, %v5952_v47 }
 0x471   : > { %4499 = vmatmul.mubr.bf16.vlgmr.msra.gmra.mrb[112].mxu0 %v6223_v44  ;;  %3466 = vmatprep.mubr.bf16.mxu1 %v6224_v0  ;;  %v6236_v11 = vpack.c.bf16 %v5964_v60, %v5961_v45 }
 0x472   : > { %4522 = vmatpush3.bf16.msra.mxu1 %v5434_v20  ;;  %4502 = vmatprep.mubr.bf16.mxu0 %v2741_v63  ;;  %v6226_v20 = vpack.c.bf16 %v5886_v36, %v5883_v27 }
 0x473   : > { %4515 = vmatprep.subr.bf16.mxu1 %v5483_v55 }
 0x476   : > { %4523 = vmatpush3.bf16.msra.mxu1 %v5483_v55  ;;  %v6228_v55 = vld [vmem:[#allocation2_spill] sm:$0xff] }
 0x477   : > { %4516 = vmatprep.subr.bf16.mxu1 %v5528_v13 }
 0x478   : > { %3467 = vmatmul.mubr.bf16.gmra.mrb[92].mxu1 %v2732_v17 }
 0x479   : > { %4503 = vmatmul.mubr.bf16.gmra.mrb[116].mxu0 %v6225_v25  ;;  %3474 = vmatprep.mubr.bf16.mxu1 %v6226_v20 }
 0x47a   : > { %4506 = vmatprep.mubr.bf16.mxu0 %v6227_v29  ;;  %4524 = vmatpush3.bf16.msra.mxu1 %v5528_v13  ;;  %v6231_v13 = vld [vmem:[#allocation3_spill] sm:$0xff] }
 0x47b   : > { %4517 = vmatprep.subr.bf16.mxu1 %v5563_v51 }
 0x47e   : > { %4525 = vmatpush3.bf16.msra.mxu1 %v5563_v51  ;;  %v6232_v51 = vld [vmem:[#allocation4_spill] sm:$0xff] }
 0x47f   : > { %4518 = vmatprep.subr.bf16.mxu1 %v6228_v55 }
 0x480   : > { %3475 = vmatmul.mubr.bf16.gmra.mrb[96].mxu1 %v6229_v22 }
 0x481   : > { %4507 = vmatmul.mubr.bf16.gmra.mrb[120].mxu0 %v2762_v62  ;;  %3482 = vmatprep.mubr.bf16.mxu1 %v6230_v26 }
 0x482   : > { %4526 = vmatpush3.bf16.msra.mxu1 %v6228_v55 }
 0x483   : > { %4519 = vmatprep.subr.bf16.mxu1 %v6231_v13 }
 0x486   : > { %4527 = vmatpush3.bf16.msra.mxu1 %v6231_v13 }
 0x487   : > { %4520 = vmatprep.subr.bf16.mxu1 %v6232_v51 }
 0x488   : > { %3483 = vmatmul.mubr.bf16.gmra.mrb[100].mxu1 %v6233_v21 }
 0x489   : > { %3490 = vmatprep.mubr.bf16.mxu1 %v6234_v10 }
 0x48a   : > { %4528 = vmatpush3.bf16.msra.mxu1 %v6232_v51 }
 0x48b   : > { %4521 = vmatprep.subr.bf16.mxu1 %v6235_v48 }
 0x48e   : > { %4529 = vmatpush3.bf16.msra.mxu1 %v6235_v48 }
 0x490   : > { %3491 = vmatmul.mubr.bf16.gmra.mrb[104].mxu1 %v6236_v11 }
 0x491   : > { %3498 = vmatprep.mubr.bf16.mxu1 %v2761_v32 }
 0x498   : > { %3499 = vmatmul.mubr.bf16.gmra.mrb[108].mxu1 %v2760_v2 }
 0x499   : > { %3506 = vmatprep.mubr.bf16.mxu1 %v2768_v9 }
 0x4a0   : > { %3507 = vmatmul.mubr.bf16.gmra.mrb[112].mxu1 %v2767_v52 }
 0x4a1   : > { %3514 = vmatprep.mubr.bf16.mxu1 %v2775_v53 }
 0x4a8   : > { %3515 = vmatmul.mubr.bf16.gmra.mrb[116].mxu1 %v2774_v43 }
 0x4a9   : > { %4510 = vmatprep.mubr.bf16.mxu1 %v2769_v41 }
 0x4b0   : > { %4511 = vmatmul.mubr.bf16.vlgmr.msra.gmra.mrb[120].mxu1 %v2776_v58 }
 0x501   : > { %v4178_v46 = vpop.f32.mrb[56].mxu1  ;;  %v4242_v63 = vpop.f32.mrb[80].mxu0 }
 0x502   : > { %v4179_v12 = vpop.f32.mrb[57].mxu1  ;;  %v4243_v17 = vpop.f32.mrb[81].mxu0 }
 0x503   : > { %v4180_v40 = vadd.f32 %v4179_v12, %v4178_v46  ;;  %v4244_v7 = vadd.f32 %v4243_v17, %v4242_v63  ;;  %v4181_v37 = vpop.f32.mrb[58].mxu1  ;;  %v4245_v27 = vpop.f32.mrb[82].mxu0 }
 0x504   : > { %v4182_v36 = vpop.f32.mrb[59].mxu1  ;;  %v4246_v15 = vpop.f32.mrb[83].mxu0 }
 0x505   : > { %v3267_v18 = vadd.f32 %v4180_v40, %v6093_v19  ;;  %v4183_v3 = vadd.f32 %v4182_v36, %v4181_v37  ;;  %v4247_v1 = vadd.f32 %v4246_v15, %v4245_v27 }
 0x507   : > { %v6096_v14 = vadd.f32 %v4244_v7, %v3267_v18  ;;  %v3270_v8 = vadd.f32 %v4183_v3, %v6093_v19 }
 0x509   : > { %v6099_v62 = vadd.f32 %v4247_v1, %v3270_v8  ;;  %v4184_v54 = vpop.f32.mrb[60].mxu1 }
 0x50a   : > { %v4248_v50 = vpop.f32.mrb[84].mxu0  ;;  %v4185_v31 = vpop.f32.mrb[61].mxu1 }
 0x50b   : > { %v4186_v47 = vadd.f32 %v4185_v31, %v4184_v54  ;;  %v4249_v30 = vpop.f32.mrb[85].mxu0  ;;  %v4187_v45 = vpop.f32.mrb[62].mxu1 }
 0x50c   : > { %v4250_v60 = vadd.f32 %v4249_v30, %v4248_v50  ;;  %v4251_v32 = vpop.f32.mrb[86].mxu0  ;;  %v4188_v2 = vpop.f32.mrb[63].mxu1 }
 0x50d   : > { %v3275_v9 = vadd.f32 %v4186_v47, %v6093_v19  ;;  %v4189_v33 = vadd.f32 %v4188_v2, %v4187_v45  ;;  %v4252_v61 = vpop.f32.mrb[87].mxu0 }
 0x50e   : > { %v4253_v59 = vadd.f32 %v4252_v61, %v4251_v32 }
 0x50f   : > { %v6102_v52 = vadd.f32 %v4250_v60, %v3275_v9  ;;  %v3278_v49 = vadd.f32 %v4189_v33, %v6093_v19 }
 0x511   : > { %v6105_v34 = vadd.f32 %v4253_v59, %v3278_v49  ;;  %v4190_v35 = vpop.f32.mrb[64].mxu1 }
 0x512   : > { %v4254_v53 = vpop.f32.mrb[88].mxu0  ;;  %v4191_v28 = vpop.f32.mrb[65].mxu1 }
 0x513   : > { %v4192_v38 = vadd.f32 %v4191_v28, %v4190_v35  ;;  %v4255_v39 = vpop.f32.mrb[89].mxu0  ;;  %v4193_v43 = vpop.f32.mrb[66].mxu1 }
 0x514   : > { %v4256_v24 = vadd.f32 %v4255_v39, %v4254_v53  ;;  %v4257_v56 = vpop.f32.mrb[90].mxu0  ;;  %v4194_v57 = vpop.f32.mrb[67].mxu1 }
 0x515   : > { %v3283_v23 = vadd.f32 %v4192_v38, %v6093_v19  ;;  %v4195_v42 = vadd.f32 %v4194_v57, %v4193_v43  ;;  %v4258_v16 = vpop.f32.mrb[91].mxu0 }
 0x516   : > { %v4259_v5 = vadd.f32 %v4258_v16, %v4257_v56 }
 0x517   : > { %v6108_v6 = vadd.f32 %v4256_v24, %v3283_v23  ;;  %v3286_v58 = vadd.f32 %v4195_v42, %v6093_v19 }
 0x519   : > { %v6111_v44 = vadd.f32 %v4259_v5, %v3286_v58  ;;  %v4196_v0 = vpop.f32.mrb[68].mxu1 }
 0x51a   : > { %v4260_v4 = vpop.f32.mrb[92].mxu0  ;;  %v4197_v41 = vpop.f32.mrb[69].mxu1 }
 0x51b   : > { %v4198_v25 = vadd.f32 %v4197_v41, %v4196_v0  ;;  %v4261_v20 = vpop.f32.mrb[93].mxu0  ;;  %v4199_v29 = vpop.f32.mrb[70].mxu1 }
 0x51c   : > { %v4262_v55 = vadd.f32 %v4261_v20, %v4260_v4  ;;  %v4263_v22 = vpop.f32.mrb[94].mxu0  ;;  %v4200_v26 = vpop.f32.mrb[71].mxu1 }
 0x51d   : > { %v3291_v13 = vadd.f32 %v4198_v25, %v6093_v19  ;;  %v4201_v51 = vadd.f32 %v4200_v26, %v4199_v29  ;;  %v4264_v21 = vpop.f32.mrb[95].mxu0 }
 0x51e   : > { %v4265_v10 = vadd.f32 %v4264_v21, %v4263_v22 }
 0x51f   : > { %v6114_v48 = vadd.f32 %v4262_v55, %v3291_v13  ;;  %v3294_v11 = vadd.f32 %v4201_v51, %v6093_v19 }
 0x521   : > { %v6117_v46 = vadd.f32 %v4265_v10, %v3294_v11 }
 0x522   : > { %v4202_v63 = vpop.f32.mrb[72].mxu1 }
 0x523   : > { %v4203_v17 = vpop.f32.mrb[73].mxu1 }
 0x524   : > { %v4266_v12 = vpop.f32.mrb[96].mxu0  ;;  %v4204_v40 = vadd.f32 %v4203_v17, %v4202_v63  ;;  %v4205_v37 = vpop.f32.mrb[74].mxu1 }
 0x525   : > { %v4267_v7 = vpop.f32.mrb[97].mxu0  ;;  %v4206_v15 = vpop.f32.mrb[75].mxu1 }
 0x526   : > { %v4268_v27 = vadd.f32 %v4267_v7, %v4266_v12  ;;  %v4269_v36 = vpop.f32.mrb[98].mxu0  ;;  %v3299_v18 = vadd.f32 %v4204_v40, %v6093_v19  ;;  %v4207_v3 = vadd.f32 %v4206_v15, %v4205_v37 }
 0x527   : > { %v4270_v1 = vpop.f32.mrb[99].mxu0 }
 0x528   : > { %v4271_v8 = vadd.f32 %v4270_v1, %v4269_v36  ;;  %v6120_v54 = vadd.f32 %v4268_v27, %v3299_v18  ;;  %v3302_v50 = vadd.f32 %v4207_v3, %v6093_v19 }
 0x52a   : > { %v6123_v31 = vadd.f32 %v4271_v8, %v3302_v50 }
 0x52b   : > { %v4208_v47 = vpop.f32.mrb[76].mxu1 }
 0x52c   : > { %v4272_v30 = vpop.f32.mrb[100].mxu0  ;;  %v4209_v45 = vpop.f32.mrb[77].mxu1 }
 0x52d   : > { %v4210_v60 = vadd.f32 %v4209_v45, %v4208_v47  ;;  %v4273_v32 = vpop.f32.mrb[101].mxu0  ;;  %v4211_v2 = vpop.f32.mrb[78].mxu1 }
 0x52e   : > { %v4274_v9 = vadd.f32 %v4273_v32, %v4272_v30  ;;  %v4275_v33 = vpop.f32.mrb[102].mxu0  ;;  %v4212_v61 = vpop.f32.mrb[79].mxu1 }
 0x52f   : > { %v3307_v59 = vadd.f32 %v4210_v60, %v6093_v19  ;;  %v4213_v49 = vadd.f32 %v4212_v61, %v4211_v2  ;;  %v4276_v35 = vpop.f32.mrb[103].mxu0 }
 0x530   : > { %v4277_v53 = vadd.f32 %v4276_v35, %v4275_v33 }
 0x531   : > { %v6126_v28 = vadd.f32 %v4274_v9, %v3307_v59  ;;  %v3310_v38 = vadd.f32 %v4213_v49, %v6093_v19 }
 0x533   : > { %v6129_v39 = vadd.f32 %v4277_v53, %v3310_v38  ;;  %v4214_v43 = vpop.f32.mrb[80].mxu1 }
 0x534   : > { %v4278_v24 = vpop.f32.mrb[104].mxu0  ;;  %v4215_v56 = vpop.f32.mrb[81].mxu1 }
 0x535   : > { %v4216_v57 = vadd.f32 %v4215_v56, %v4214_v43  ;;  %v4279_v23 = vpop.f32.mrb[105].mxu0  ;;  %v4217_v42 = vpop.f32.mrb[82].mxu1 }
 0x536   : > { %v4280_v16 = vadd.f32 %v4279_v23, %v4278_v24  ;;  %v4281_v5 = vpop.f32.mrb[106].mxu0  ;;  %v4218_v58 = vpop.f32.mrb[83].mxu1 }
 0x537   : > { %v3315_v0 = vadd.f32 %v4216_v57, %v6093_v19  ;;  %v4219_v4 = vadd.f32 %v4218_v58, %v4217_v42  ;;  %v4282_v41 = vpop.f32.mrb[107].mxu0 }
 0x538   : > { %v4283_v25 = vadd.f32 %v4282_v41, %v4281_v5 }
 0x539   : > { %v6132_v20 = vadd.f32 %v4280_v16, %v3315_v0  ;;  %v3318_v29 = vadd.f32 %v4219_v4, %v6093_v19 }
 0x53b   : > { %v6135_v55 = vadd.f32 %v4283_v25, %v3318_v29  ;;  %v4220_v22 = vpop.f32.mrb[84].mxu1 }
 0x53c   : > { %v4284_v26 = vpop.f32.mrb[108].mxu0  ;;  %v4221_v13 = vpop.f32.mrb[85].mxu1 }
 0x53d   : > { %v4222_v51 = vadd.f32 %v4221_v13, %v4220_v22  ;;  %v4285_v21 = vpop.f32.mrb[109].mxu0  ;;  %v4223_v10 = vpop.f32.mrb[86].mxu1 }
 0x53e   : > { %v4286_v11 = vadd.f32 %v4285_v21, %v4284_v26  ;;  %v4287_v63 = vpop.f32.mrb[110].mxu0  ;;  %v4224_v12 = vpop.f32.mrb[87].mxu1 }
 0x53f   : > { %v3323_v17 = vadd.f32 %v4222_v51, %v6093_v19  ;;  %v4225_v40 = vadd.f32 %v4224_v12, %v4223_v10  ;;  %v4288_v7 = vpop.f32.mrb[111].mxu0 }
 0x540   : > { %v4289_v37 = vadd.f32 %v4288_v7, %v4287_v63 }
 0x541   : > { %v6138_v27 = vadd.f32 %v4286_v11, %v3323_v17  ;;  %v3326_v36 = vadd.f32 %v4225_v40, %v6093_v19 }
 0x543   : > { %v6141_v15 = vadd.f32 %v4289_v37, %v3326_v36  ;;  %v4306_v18 = vpop.f32.mrb[88].mxu1 }
 0x544   : > { %v4500_v3 = vpop.f32.mrb[112].mxu0  ;;  %v4307_v1 = vpop.f32.mrb[89].mxu1 }
 0x545   : > { %v4308_v8 = vadd.f32 %v4307_v1, %v4306_v18  ;;  %v3557_v50 = vpop.f32.mrb[113].mxu0  ;;  %v4309_v47 = vpop.f32.mrb[90].mxu1 }
 0x546   : > { %v4501_v30 = vpop.f32.mrb[114].mxu0  ;;  %v4310_v45 = vpop.f32.mrb[91].mxu1 }
 0x547   : > { %v3461_v60 = vadd.f32 %v4308_v8, %v6096_v14  ;;  %v4311_v32 = vadd.f32 %v4310_v45, %v4309_v47  ;;  %v3560_v2 = vpop.f32.mrb[115].mxu0 }
 0x549   : > { %v3558_v19 = vadd.f32 %v3557_v50, %v3461_v60  ;;  %v3464_v9 = vadd.f32 %v4311_v32, %v6099_v62 }
 0x54b   : > { %3620 = vst [vmem:[%s6148_s16] sm:$0xff] %v3558_v19  ;;  %v3561_v33 = vadd.f32 %v3560_v2, %v3464_v9  ;;  %v4312_v61 = vpop.f32.mrb[92].mxu1 }
 0x54c   : > { %v4504_v59 = vpop.f32.mrb[116].mxu0  ;;  %v4313_v49 = vpop.f32.mrb[93].mxu1 }
 0x54d   : > { %3621 = vst [vmem:[%s6148_s16 + $0x8] sm:$0xff] %v3561_v33  ;;  %v4314_v14 = vadd.f32 %v4313_v49, %v4312_v61  ;;  %v3573_v35 = vpop.f32.mrb[117].mxu0  ;;  %v4315_v53 = vpop.f32.mrb[94].mxu1 }
 0x54e   : > { %v4505_v38 = vpop.f32.mrb[118].mxu0  ;;  %v4316_v43 = vpop.f32.mrb[95].mxu1 }
 0x54f   : > { %v3469_v24 = vadd.f32 %v4314_v14, %v6102_v52  ;;  %v4317_v56 = vadd.f32 %v4316_v43, %v4315_v53  ;;  %v3576_v57 = vpop.f32.mrb[119].mxu0 }
 0x551   : > { %v3566_v23 = vadd.f32 %v4500_v3, %v3469_v24  ;;  %v3472_v62 = vadd.f32 %v4317_v56, %v6105_v34 }
 0x553   : > { %3622 = vst [vmem:[%s6148_s16 + $0x10] sm:$0xff] %v3566_v23  ;;  %v3569_v42 = vadd.f32 %v4501_v30, %v3472_v62  ;;  %v4318_v16 = vpop.f32.mrb[96].mxu1 }
 0x554   : > { %v4508_v5 = vpop.f32.mrb[120].mxu0  ;;  %v4319_v58 = vpop.f32.mrb[97].mxu1 }
 0x555   : > { %3623 = vst [vmem:[%s6148_s16 + $0x18] sm:$0xff] %v3569_v42  ;;  %v4320_v0 = vadd.f32 %v4319_v58, %v4318_v16  ;;  %v3589_v4 = vpop.f32.mrb[121].mxu0  ;;  %v4321_v41 = vpop.f32.mrb[98].mxu1 }
 0x556   : > { %v4509_v25 = vpop.f32.mrb[122].mxu0  ;;  %v4322_v29 = vpop.f32.mrb[99].mxu1 }
 0x557   : > { %v3477_v52 = vadd.f32 %v4320_v0, %v6108_v6  ;;  %v4323_v22 = vadd.f32 %v4322_v29, %v4321_v41  ;;  %v3592_v26 = vpop.f32.mrb[123].mxu0 }
 0x559   : > { %v3574_v13 = vadd.f32 %v3573_v35, %v3477_v52  ;;  %v3480_v34 = vadd.f32 %v4323_v22, %v6111_v44 }
 0x55b   : > { %3624 = vst [vmem:[%s6148_s16 + $0x20] sm:$0xff] %v3574_v13  ;;  %v3577_v51 = vadd.f32 %v3576_v57, %v3480_v34  ;;  %v4324_v21 = vpop.f32.mrb[100].mxu1 }
 0x55c   : > { %v4325_v10 = vpop.f32.mrb[101].mxu1 }
 0x55d   : > { %3625 = vst [vmem:[%s6148_s16 + $0x28] sm:$0xff] %v3577_v51  ;;  %v4326_v11 = vadd.f32 %v4325_v10, %v4324_v21  ;;  %v4327_v63 = vpop.f32.mrb[102].mxu1 }
 0x55e   : > { %v4328_v12 = vpop.f32.mrb[103].mxu1 }
 0x55f   : > { %v3485_v17 = vadd.f32 %v4326_v11, %v6114_v48  ;;  %v4329_v40 = vadd.f32 %v4328_v12, %v4327_v63 }
 0x561   : > { %v3582_v6 = vadd.f32 %v4504_v59, %v3485_v17  ;;  %v3488_v7 = vadd.f32 %v4329_v40, %v6117_v46 }
 0x563   : > { %3626 = vst [vmem:[%s6148_s16 + $0x30] sm:$0xff] %v3582_v6  ;;  %v3585_v37 = vadd.f32 %v4505_v38, %v3488_v7  ;;  %v4330_v44 = vpop.f32.mrb[104].mxu1 }
 0x564   : > { %v4331_v36 = vpop.f32.mrb[105].mxu1 }
 0x565   : > { %3627 = vst [vmem:[%s6148_s16 + $0x38] sm:$0xff] %v3585_v37  ;;  %v4332_v18 = vadd.f32 %v4331_v36, %v4330_v44  ;;  %v4333_v3 = vpop.f32.mrb[106].mxu1 }
 0x566   : > { %v4334_v1 = vpop.f32.mrb[107].mxu1 }
 0x567   : > { %v3493_v8 = vadd.f32 %v4332_v18, %v6120_v54  ;;  %v4335_v50 = vadd.f32 %v4334_v1, %v4333_v3 }
 0x569   : > { %v3590_v47 = vadd.f32 %v3589_v4, %v3493_v8  ;;  %v3496_v48 = vadd.f32 %v4335_v50, %v6123_v31 }
 0x56b   : > { %3628 = vst [vmem:[%s6148_s16 + $0x40] sm:$0xff] %v3590_v47  ;;  %v3593_v30 = vadd.f32 %v3592_v26, %v3496_v48  ;;  %v4336_v46 = vpop.f32.mrb[108].mxu1 }
 0x56c   : > { %v4337_v45 = vpop.f32.mrb[109].mxu1 }
 0x56d   : > { %3629 = vst [vmem:[%s6148_s16 + $0x48] sm:$0xff] %v3593_v30  ;;  %v4338_v60 = vadd.f32 %v4337_v45, %v4336_v46  ;;  %v4339_v32 = vpop.f32.mrb[110].mxu1 }
 0x56e   : > { %v4340_v2 = vpop.f32.mrb[111].mxu1 }
 0x56f   : > { %v3501_v19 = vadd.f32 %v4338_v60, %v6126_v28  ;;  %v4341_v9 = vadd.f32 %v4340_v2, %v4339_v32 }
 0x571   : > { %v3598_v33 = vadd.f32 %v4508_v5, %v3501_v19  ;;  %v3504_v54 = vadd.f32 %v4341_v9, %v6129_v39 }
 0x573   : > { %3630 = vst [vmem:[%s6148_s16 + $0x50] sm:$0xff] %v3598_v33  ;;  %v3601_v61 = vadd.f32 %v4509_v25, %v3504_v54  ;;  %v4342_v59 = vpop.f32.mrb[112].mxu1 }
 0x574   : > { %v4343_v49 = vpop.f32.mrb[113].mxu1 }
 0x575   : > { %3631 = vst [vmem:[%s6148_s16 + $0x58] sm:$0xff] %v3601_v61  ;;  %v4344_v31 = vadd.f32 %v4343_v49, %v4342_v59  ;;  %v4345_v14 = vpop.f32.mrb[114].mxu1 }
 0x576   : > { %v4346_v35 = vpop.f32.mrb[115].mxu1 }
 0x577   : > { %v4347_v53 = vadd.f32 %v4346_v35, %v4345_v14  ;;  %v3509_v38 = vadd.f32 %v4344_v31, %v6132_v20 }
 0x579   : > { %v3512_v43 = vadd.f32 %v4347_v53, %v6135_v55 }
 0x57b   : > { %v4348_v24 = vpop.f32.mrb[116].mxu1 }
 0x57c   : > { %v4349_v28 = vpop.f32.mrb[117].mxu1 }
 0x57d   : > { %v4350_v56 = vadd.f32 %v4349_v28, %v4348_v24  ;;  %v4351_v39 = vpop.f32.mrb[118].mxu1 }
 0x57e   : > { %v4352_v57 = vpop.f32.mrb[119].mxu1 }
 0x57f   : > { %v4353_v23 = vadd.f32 %v4352_v57, %v4351_v39  ;;  %v3517_v62 = vadd.f32 %v4350_v56, %v6138_v27 }
 0x581   : > { %v3520_v42 = vadd.f32 %v4353_v23, %v6141_v15 }
 0x583   : > { %v4512_v16 = vpop.f32.mrb[120].mxu1 }
 0x584   : > { %v3614_v5 = vadd.f32 %v4512_v16, %v3517_v62  ;;  %v3605_v58 = vpop.f32.mrb[121].mxu1 }
 0x585   : > { %v3606_v0 = vadd.f32 %v3605_v58, %v3509_v38  ;;  %v4513_v20 = vpop.f32.mrb[122].mxu1 }
 0x586   : > { %3634 = vst [vmem:[%s6148_s16 + $0x70] sm:$0xff] %v3614_v5  ;;  %v3617_v55 = vadd.f32 %v4513_v20, %v3520_v42  ;;  %v3608_v4 = vpop.f32.mrb[123].mxu1 }
 0x587   : > { %3632 = vst [vmem:[%s6148_s16 + $0x60] sm:$0xff] %v3606_v0  ;;  %v3609_v41 = vadd.f32 %v3608_v4, %v3512_v43 }
 0x588   : > { %3635 = vst [vmem:[%s6148_s16 + $0x78] sm:$0xff] %v3617_v55 }
 0x589   : > { %3633 = vst [vmem:[%s6148_s16 + $0x68] sm:$0xff] %v3609_v41 }
 0x58a PF: > { %s22_s21 = sadd.s32 1, %s4774_s21  }
 0x58b   : > { %p19_p4 = scmp.ge.s32.totalorder %s22_s21, 4  }
 0x58d   :  { %21 = sbr.rel (!%p19_p4) target bundleno = 1 (0x1), region = 98 }

</bundles_post_ra>
